<compile_context>
chip_gen: v7x
topology: tpu7x:2x2x1
jax: 0.10.0
libtpu: 0.0.40
codegen_flags: <defaults>
</compile_context>

<pallas_src>
import jax
import jax.numpy as jnp
from jax.experimental import pallas as pl
from jax.experimental.pallas import tpu as pltpu

INPUT_SIZE = 28 * 28   # 784
HIDDEN_SIZE = 500
NUM_CLASSES = 10

HIDDEN_PAD = 512       # lane-aligned hidden width
OUT_PAD = 128          # lane-aligned output width


def _mlp_kernel(x_ref, w1_ref, b1_ref, w2_ref, b2_ref, o_ref):
    # fc1: (TB, 784)bf16 @ (784, 512)bf16 -> f32 accumulate, bias in f32.
    h = jnp.dot(x_ref[...], w1_ref[...], preferred_element_type=jnp.float32)
    h = h + b1_ref[...]
    # (ReLU intentionally NOT applied — matches the PyTorch forward exactly.)
    h = h.astype(jnp.bfloat16)
    # fc2: (TB, 512)bf16 @ (512, 128)bf16 -> f32 accumulate, bias in f32.
    out = jnp.dot(h, w2_ref[...], preferred_element_type=jnp.float32)
    out = out + b2_ref[...]
    o_ref[...] = out.astype(o_ref.dtype)


def mlp_forward(x, w1_t, b1, w2_t, b2, *, tb=128):
    """Forward pass of the (relu-less) MNIST MLP.

    x:    (B, 784) float32
    w1_t: (784, 500) float32   (nn.Linear weight, transposed to (in, out))
    b1:   (1, 500)  float32
    w2_t: (500, 10) float32
    b2:   (1, 10)   float32
    returns (B, 10) float32
    """
    B = x.shape[0]

    # ---- layout plumbing in the JAX wrapper (cheap, fused by XLA) ----------
    # Pad batch to a multiple of the tile.
    b_pad = pl.cdiv(B, tb) * tb
    if b_pad != B:
        x = jnp.pad(x, ((0, b_pad - B), (0, 0)))

    # Zero-pad to lane-aligned widths; padded hidden columns are exactly zero
    # (zero w1 cols, zero b1 entries) and feed zero w2 rows, so they contribute
    # nothing.  Padded output columns are sliced off below.
    w1p = jnp.pad(w1_t, ((0, 0), (0, HIDDEN_PAD - HIDDEN_SIZE)))
    b1p = jnp.pad(b1, ((0, 0), (0, HIDDEN_PAD - HIDDEN_SIZE)))
    w2p = jnp.pad(w2_t, ((0, HIDDEN_PAD - HIDDEN_SIZE), (0, OUT_PAD - NUM_CLASSES)))
    b2p = jnp.pad(b2, ((0, 0), (0, OUT_PAD - NUM_CLASSES)))

    # bf16 operands for the MXU fast path (accumulation stays f32 in-kernel).
    x_bf = x.astype(jnp.bfloat16)
    w1_bf = w1p.astype(jnp.bfloat16)
    w2_bf = w2p.astype(jnp.bfloat16)
    b1_f32 = b1p.astype(jnp.float32)
    b2_f32 = b2p.astype(jnp.float32)

    grid = (b_pad // tb,)

    out_padded = pl.pallas_call(
        _mlp_kernel,
        out_shape=jax.ShapeDtypeStruct((b_pad, OUT_PAD), jnp.float32),
        grid_spec=pltpu.PrefetchScalarGridSpec(
            num_scalar_prefetch=0,
            grid=grid,
            in_specs=[
                # x tile marches over the batch; weights/biases stay resident
                # (same block index for every grid step).
                pl.BlockSpec((tb, INPUT_SIZE), lambda i: (i, 0)),
                pl.BlockSpec((INPUT_SIZE, HIDDEN_PAD), lambda i: (0, 0)),
                pl.BlockSpec((1, HIDDEN_PAD), lambda i: (0, 0)),
                pl.BlockSpec((HIDDEN_PAD, OUT_PAD), lambda i: (0, 0)),
                pl.BlockSpec((1, OUT_PAD), lambda i: (0, 0)),
            ],
            out_specs=pl.BlockSpec((tb, OUT_PAD), lambda i: (i, 0)),
        ),
        compiler_params=pltpu.CompilerParams(
            # Batch tiles are independent -> both TCs on v7x, no-op on v5e/v6e.
            dimension_semantics=("parallel",),
            # Tiny footprint (~2 MB with double-buffering); keep the limit
            # explicit and well under v7x's 32 MiB scoped default.
            vmem_limit_bytes=32 * 1024 * 1024,
        ),
    )(x_bf, w1_bf, b1_f32, w2_bf, b2_f32)

    return out_padded[:B, :NUM_CLASSES]


def init_params(key):
    """Deterministic init mimicking nn.Linear's U(-1/sqrt(fan_in), 1/sqrt(fan_in))."""
    k1, k2, k3, k4 = jax.random.split(key, 4)
    bound1 = 1.0 / jnp.sqrt(float(INPUT_SIZE))
    bound2 = 1.0 / jnp.sqrt(float(HIDDEN_SIZE))
    # nn.Linear stores weight as (out, in); we keep the transposed (in, out)
    # layout so the kernel does x @ W directly.
    w1_t = jax.random.uniform(k1, (INPUT_SIZE, HIDDEN_SIZE), jnp.float32,
                              minval=-bound1, maxval=bound1)
    b1 = jax.random.uniform(k2, (1, HIDDEN_SIZE), jnp.float32,
                            minval=-bound1, maxval=bound1)
    w2_t = jax.random.uniform(k3, (HIDDEN_SIZE, NUM_CLASSES), jnp.float32,
                              minval=-bound2, maxval=bound2)
    b2 = jax.random.uniform(k4, (1, NUM_CLASSES), jnp.float32,
                            minval=-bound2, maxval=bound2)
    return w1_t, b1, w2_t, b2


if __name__ == "__main__":
    key = jax.random.PRNGKey(0)
    kx, kp = jax.random.split(key)

    # 256 rows -> two 128-row tiles: exercises the batch grid / pipelining and
    # keeps the MXU M-dimension reasonably occupied (B=8 would be pure
    # launch+DMA overhead).
    B = 256
    x = jax.random.normal(kx, (B, INPUT_SIZE), jnp.float32)
    w1_t, b1, w2_t, b2 = init_params(kp)

    out = mlp_forward(x, w1_t, b1, w2_t, b2, tb=128)
    out = jax.block_until_ready(out)
    assert out.shape == (B, NUM_CLASSES)

    # Reference with matching bf16 quantization of the MXU operands (f32
    # accumulation), so only accumulation order differs from the kernel.
    x_q = x.astype(jnp.bfloat16).astype(jnp.float32)
    w1_q = w1_t.astype(jnp.bfloat16).astype(jnp.float32)
    w2_q = w2_t.astype(jnp.bfloat16).astype(jnp.float32)
    h_ref = x_q @ w1_q + b1
    h_ref = h_ref.astype(jnp.bfloat16).astype(jnp.float32)
    ref = h_ref @ w2_q + b2
    assert jnp.allclose(out, ref, atol=1e-2, rtol=1e-2), (
        float(jnp.max(jnp.abs(out - ref))))

    print("KERNEL_OK")
</pallas_src>

<mosaic_0001>
module attributes {stable_mosaic.version = 11 : i64} {
  func.func @_mlp_kernel(%arg0: i32, %arg1: memref<128x784xbf16, #tpu.memory_space<vmem>>, %arg2: memref<784x512xbf16, #tpu.memory_space<vmem>>, %arg3: memref<1x512xf32, #tpu.memory_space<vmem>>, %arg4: memref<512x128xbf16, #tpu.memory_space<vmem>>, %arg5: memref<1x128xf32, #tpu.memory_space<vmem>>, %arg6: memref<128x128xf32, #tpu.memory_space<vmem>>) attributes {dimension_semantics = [#tpu.dimension_semantics<parallel>], iteration_bounds = array<i64: 2>, scalar_prefetch = 0 : i64, scratch_operands = 0 : i64, tpu.core_type = #tpu.core_type<tc>, window_params = [{transform_indices = @transform_0, window_bounds = array<i64: 128, 784>}, {pipeline_mode = #tpu.pipeline_mode<synchronous>, transform_indices = @transform_1, window_bounds = array<i64: 784, 512>}, {pipeline_mode = #tpu.pipeline_mode<synchronous>, transform_indices = @transform_2, window_bounds = array<i64: 1, 512>}, {pipeline_mode = #tpu.pipeline_mode<synchronous>, transform_indices = @transform_3, window_bounds = array<i64: 512, 128>}, {pipeline_mode = #tpu.pipeline_mode<synchronous>, transform_indices = @transform_4, window_bounds = array<i64: 1, 128>}, {transform_indices = @transform_5, window_bounds = array<i64: 128, 128>}]} {
    %c0 = arith.constant 0 : index
    %c0_0 = arith.constant 0 : index
    %0 = vector.load %arg1[%c0, %c0_0] : memref<128x784xbf16, #tpu.memory_space<vmem>>, vector<128x784xbf16>
    %c0_1 = arith.constant 0 : index
    %c0_2 = arith.constant 0 : index
    %1 = vector.load %arg2[%c0_1, %c0_2] : memref<784x512xbf16, #tpu.memory_space<vmem>>, vector<784x512xbf16>
    %cst = arith.constant dense<0.000000e+00> : vector<128x512xf32>
    %2 = tpu.matmul %0, %1, %cst {dimension_numbers = #tpu.dot_dimension_numbers<[1], [0], [0], [1], [0, 0, 1, 1], [], []>} : vector<128x784xbf16>, vector<784x512xbf16>, vector<128x512xf32> -> vector<128x512xf32>
    %c0_3 = arith.constant 0 : index
    %c0_4 = arith.constant 0 : index
    %3 = vector.load %arg3[%c0_3, %c0_4] : memref<1x512xf32, #tpu.memory_space<vmem>>, vector<1x512xf32>
    %4 = vector.broadcast %3 : vector<1x512xf32> to vector<128x512xf32>
    %5 = arith.addf %2, %4 : vector<128x512xf32>
    %6 = arith.truncf %5 : vector<128x512xf32> to vector<128x512xbf16>
    %c0_5 = arith.constant 0 : index
    %c0_6 = arith.constant 0 : index
    %7 = vector.load %arg4[%c0_5, %c0_6] : memref<512x128xbf16, #tpu.memory_space<vmem>>, vector<512x128xbf16>
    %cst_7 = arith.constant dense<0.000000e+00> : vector<128x128xf32>
    %8 = tpu.matmul %6, %7, %cst_7 {dimension_numbers = #tpu.dot_dimension_numbers<[1], [0], [0], [1], [0, 0, 1, 1], [], []>} : vector<128x512xbf16>, vector<512x128xbf16>, vector<128x128xf32> -> vector<128x128xf32>
    %c0_8 = arith.constant 0 : index
    %c0_9 = arith.constant 0 : index
    %9 = vector.load %arg5[%c0_8, %c0_9] : memref<1x128xf32, #tpu.memory_space<vmem>>, vector<1x128xf32>
    %10 = vector.broadcast %9 : vector<1x128xf32> to vector<128x128xf32>
    %11 = arith.addf %8, %10 : vector<128x128xf32>
    %c0_10 = arith.constant 0 : index
    %c0_11 = arith.constant 0 : index
    %12 = vector.load %arg6[%c0_10, %c0_11] : memref<128x128xf32, #tpu.memory_space<vmem>>, vector<128x128xf32>
    tpu.vector_store %arg6[%c0_10, %c0_11], %11 {strides = array<i32>} : memref<128x128xf32, #tpu.memory_space<vmem>>, vector<128x128xf32>,
    return
  }
  func.func @transform_0(%arg0: i32) -> (i32, i32) {
    %c0_i32 = arith.constant 0 : i32
    %c0_i32_0 = arith.constant 0 : i32
    return %arg0, %c0_i32 : i32, i32
  }
  func.func @transform_1(%arg0: i32) -> (i32, i32) {
    %c0_i32 = arith.constant 0 : i32
    %c0_i32_0 = arith.constant 0 : i32
    %c0_i32_1 = arith.constant 0 : i32
    return %c0_i32, %c0_i32_0 : i32, i32
  }
  func.func @transform_2(%arg0: i32) -> (i32, i32) {
    %c0_i32 = arith.constant 0 : i32
    %c0_i32_0 = arith.constant 0 : i32
    %c0_i32_1 = arith.constant 0 : i32
    return %c0_i32, %c0_i32_0 : i32, i32
  }
  func.func @transform_3(%arg0: i32) -> (i32, i32) {
    %c0_i32 = arith.constant 0 : i32
    %c0_i32_0 = arith.constant 0 : i32
    %c0_i32_1 = arith.constant 0 : i32
    return %c0_i32, %c0_i32_0 : i32, i32
  }
  func.func @transform_4(%arg0: i32) -> (i32, i32) {
    %c0_i32 = arith.constant 0 : i32
    %c0_i32_0 = arith.constant 0 : i32
    %c0_i32_1 = arith.constant 0 : i32
    return %c0_i32, %c0_i32_0 : i32, i32
  }
  func.func @transform_5(%arg0: i32) -> (i32, i32) {
    %c0_i32 = arith.constant 0 : i32
    %c0_i32_0 = arith.constant 0 : i32
    return %arg0, %c0_i32 : i32, i32
  }
}

</mosaic_0001>

<bundles_post_ra>
// kernel: tpu_custom_call.1
= control target key start
LH: loop header
LB: loop body
LE: loop exit
PB: predicated region body
PF: predicated region fallthrough
CT: control target
= control target key end

     0   :  { %10 = vsyncpa [#allocation3], 0  ;;  %s5538_s0 = inlined_call_operand.vmem [shape: bf16[256,784], index: 0, kind: input, shape index: {}]   ;;  %s5539_s1 = inlined_call_operand.vmem [shape: bf16[784,512], index: 1, kind: input, shape index: {}]   ;;  %s5540_s2 = inlined_call_operand.vmem [shape: f32[1,512], index: 2, kind: input, shape index: {}]   ;;  %s5541_s3 = inlined_call_operand.hbm [shape: bf16[512,128], index: 3, kind: input, shape index: {}]   ;;  %s5542_s4 = inlined_call_operand.vmem [shape: f32[1,128], index: 4, kind: input, shape index: {}]   ;;  %s5543_s5 = inlined_call_operand.hbm [shape: f32[256,128], index: 5, kind: output, shape index: {}]  }
   0x1   :  { %11 = vsyncpa [#allocation4], 0 }
   0x2   :  { %13 = vsyncpa [#allocation4 + $0x1], 0  ;;  %s4604_s18 = smov 0   ;;  %s4606_s19 = smov 0  }
   0x3   :  { %s4608_s20 = smov 0   ;;  %s4610_s21 = smov 0  }
   0x4 LB: > { %s4625_s22 = sadd.s32 4294967295, %s4565_s21   ;;  %s3309_s23 = sadd.s32 4294967294, %s4565_s21   ;;  %s4565_s21 = sphi %s4610_s21, %s5559_s21   ;;  %s4561_s20 = sphi %s4608_s20, %s5558_s20   ;;  %s4557_s19 = sphi %s4606_s19, %s5557_s19   ;;  %s4553_s18 = sphi %s4604_s18, %s5556_s18  }
   0x5   : > { %s4629_s24 = sadd.s32 1, %s4565_s21   ;;  %s136_s25 = sadd.s32 1, %s4561_s20 }
   0x6   : > { %s133_s26 = ssub.s32 %s4565_s21, %s4629_s24  ;;  %p146_p0 = scmp.ne.s32.totalorder %s4561_s20, %s4557_s19 }
   0x7   : > { %p134_p1 = scmp.eq.s32.totalorder %s133_s26, 0  ;;  %p147_p2 = scmp.eq.s32.totalorder %s4625_s22, 1 }
   0x8   : > { %p152_p3 = scmp.ne.s32.totalorder %s4557_s19, %s4553_s18  ;;  %p153_p4 = scmp.eq.s32.totalorder %s3309_s23, 1 }
   0x9   : > { %s4640_s27 = scalar_select %p134_p1, %s4561_s20, %s136_s25  }
   0xa   : > { %p4642_p5 = por %p147_p2, %p146_p0  ;;  %p4646_p6 = por %p153_p4, %p152_p3 }
   0xb   : > { %p3310_p7 = scmp.ge.s32.totalorder %s4565_s21, 1  ;;  %p160_p8 = scmp.lt.s32.totalorder %s4565_s21, 3 }
   0xc   : > { %s5547_s28 = scalar_select %p4642_p5, 1, 0 }
   0xd   : > { %s5548_s29 = scalar_select %p4646_p6, 1, 0 }
   0xe   : > { %p5544_p9 = scmp.eq.s32.totalorder %s4625_s22, 0  ;;  %p4653_p10 = pnand %p3310_p7, %p160_p8 }
   0xf   : > { %s4567_s6 = smov [#allocation2]   ;;  %s4471_s11 = scalar_lea.hbm %s5541_s3, 4096 }
  0x10   : > { %s5549_s30 = scalar_select %p4653_p10, 1, 0 }
  0x11   : > { %s178_s7 = sshll.u32 %s4567_s6, 4  ;;  %p4016_p11 = pneg %p4653_p10  ;;  %s179_s7 = int_to_ptr.vmem [resolvable:$true] %s178_s7 }
  0x12   : > { %p4472_p13 = scmp.ne.s32.totalorder %s5541_s3, %s4471_s11  ;;  %p4478_p3 = scmp.lt.u32.totalorder %s4471_s11, %s5541_s3 }
  0x13   : > { %p4661_p12 = pnand %p5544_p9, %p4016_p11 }
  0x15   : > { %p4473_p0 = pneg %p4661_p12 }
  0x17   : > { %p4474_p1 = pnand %p4473_p0, %p4472_p13 }
  0x19   : > { %p4475_p2 = pneg %p4474_p1 }
  0x1b   : > { %p4480_p4 = pnand %p4478_p3, %p4475_p2 }
  0x1d   : > { %4483 = shalt.err (!%p4480_p4)
}
  0x1e   : > { %s4484_s16 = scalar_lea.vmem %s179_s7, 4096  ;;  %p4492_p9 = scmp.lt.s32.totalorder %s179_s7, %s179_s7 }
  0x1f   : > { %p4485_p7 = scmp.ne.s32.totalorder %s179_s7, %s4484_s16  ;;  %p4493_p6 = scmp.lt.s32.totalorder %s4484_s16, %s4484_s16 }
  0x21   : > { %p4487_p8 = pnand %p4485_p7, %p4473_p0  ;;  %p4494_p5 = por %p4493_p6, %p4492_p9 }
  0x23   : > { %p4488_p11 = pneg %p4487_p8 }
  0x25   : > { %p4495_p10 = pnand %p4494_p5, %p4488_p11 }
  0x27   : > { %4498 = shalt.err (!%p4495_p10)
}
  0x28   : > { %s4568_s17 = smov 64   ;;  %s4569_s23 = smov 4  }
  0x29   : > { %4019 = dma.hbm_to_vmem [thread:$0]  (!%p4661_p12), %s5541_s3, 4096, %s179_s7, [#allocation3], %s4568_s17, %s4568_s17, %s4569_s23  }
  0x2a   : > { %p5551_p13 = scmp.ne.s32.totalorder %s5549_s30, 0 }
  0x2b   : > { %p5552_p1 = scmp.eq.s32.totalorder (!%p5551_p13), %s4625_s22, 0 }
  0x2c   : > { %207 = sbr.rel (%p5551_p13) target bundleno = 821 (0x335), region = 40 }
  0x33   : > { %4544 = dma.done.wait (%p5552_p1), [#allocation3], 4096   ;;  %p5553_p0 = pmov %p5552_p1 }
  0x34   : > { %v4065_v0 = vld [vmem:[%s5539_s1 + $0x4] ss:$16 sps:$4 sm:$0xff]   ;;  %v4067_v1 = vld [vmem:[%s5539_s1 + $0xc] ss:$16 sps:$4 sm:$0xff]   ;;  %v4069_v2 = vld [vmem:[%s5539_s1] ss:$16 sps:$4 sm:$0xff]  }
  0x35   : > { %4546 = vsyncadd (%p5553_p0), [#allocation3], 4294963200  ;;  %1812 = vmatprep.subr.bf16.mxu0 %v4065_v0  ;;  %v4070_v3 = vld [vmem:[%s5539_s1 + $0x8] ss:$16 sps:$4 sm:$0xff]   ;;  %2264 = vmatprep.subr.bf16.mxu1 %v4067_v1  ;;  %v4071_v4 = vld [vmem:[%s5539_s1 + $0x24] ss:$16 sps:$4 sm:$0xff]  }
  0x36   : > { %1813 = vmatpush1.bf16.msra.mxu0 %v4069_v2  ;;  %2265 = vmatpush1.bf16.msra.mxu1 %v4070_v3  ;;  %v4073_v5 = vld [vmem:[%s5539_s1 + $0x2c] ss:$16 sps:$4 sm:$0xff]   ;;  %v4075_v6 = vld [vmem:[%s5539_s1 + $0x20] ss:$16 sps:$4 sm:$0xff]   ;;  %v4076_v7 = vld [vmem:[%s5539_s1 + $0x28] ss:$16 sps:$4 sm:$0xff]  }
  0x37   : > { %1814 = vmatprep.subr.bf16.mxu0 %v4071_v4  ;;  %2266 = vmatprep.subr.bf16.mxu1 %v4073_v5  ;;  %v4077_v8 = vld [vmem:[%s5539_s1 + $0x44] ss:$16 sps:$4 sm:$0xff]   ;;  %v4079_v9 = vld [vmem:[%s5539_s1 + $0x4c] ss:$16 sps:$4 sm:$0xff]   ;;  %v4081_v10 = vld [vmem:[%s5539_s1 + $0x40] ss:$16 sps:$4 sm:$0xff]  }
  0x38   : > { %v4082_v11 = vld [vmem:[%s5539_s1 + $0x48] ss:$16 sps:$4 sm:$0xff]   ;;  %v4083_v12 = vld [vmem:[%s5539_s1 + $0x64] ss:$16 sps:$4 sm:$0xff]   ;;  %v4085_v13 = vld [vmem:[%s5539_s1 + $0x6c] ss:$16 sps:$4 sm:$0xff]  }
  0x39   : > { %v4087_v14 = vld [vmem:[%s5539_s1 + $0x60] ss:$16 sps:$4 sm:$0xff]   ;;  %v4088_v15 = vld [vmem:[%s5539_s1 + $0x68] ss:$16 sps:$4 sm:$0xff]   ;;  %v4089_v16 = vld [vmem:[%s5539_s1 + $0x84] ss:$16 sps:$4 sm:$0xff]  }
  0x3a   : > { %1815 = vmatpush1.bf16.msra.mxu0 %v4075_v6  ;;  %2267 = vmatpush1.bf16.msra.mxu1 %v4076_v7  ;;  %v4091_v17 = vld [vmem:[%s5539_s1 + $0x8c] ss:$16 sps:$4 sm:$0xff]   ;;  %v4093_v18 = vld [vmem:[%s5539_s1 + $0x80] ss:$16 sps:$4 sm:$0xff]   ;;  %v4094_v19 = vld [vmem:[%s5539_s1 + $0x88] ss:$16 sps:$4 sm:$0xff]  }
  0x3b   : > { %1816 = vmatprep.subr.bf16.mxu0 %v4077_v8  ;;  %2268 = vmatprep.subr.bf16.mxu1 %v4079_v9  ;;  %v4095_v20 = vld [vmem:[%s5539_s1 + $0xa4] ss:$16 sps:$4 sm:$0xff]   ;;  %v4097_v21 = vld [vmem:[%s5539_s1 + $0xac] ss:$16 sps:$4 sm:$0xff]   ;;  %v4099_v22 = vld [vmem:[%s5539_s1 + $0xa0] ss:$16 sps:$4 sm:$0xff]  }
  0x3c   : > { %v4100_v23 = vld [vmem:[%s5539_s1 + $0xa8] ss:$16 sps:$4 sm:$0xff]   ;;  %v4101_v24 = vld [vmem:[%s5539_s1 + $0xc4] ss:$16 sps:$4 sm:$0xff]   ;;  %v4103_v25 = vld [vmem:[%s5539_s1 + $0xcc] ss:$16 sps:$4 sm:$0xff]  }
  0x3d   : > { %v4105_v26 = vld [vmem:[%s5539_s1 + $0xc0] ss:$16 sps:$4 sm:$0xff]   ;;  %v4106_v27 = vld [vmem:[%s5539_s1 + $0xc8] ss:$16 sps:$4 sm:$0xff]   ;;  %v4107_v28 = vld [vmem:[%s5539_s1 + $0xe4] ss:$16 sps:$4 sm:$0xff]  }
  0x3e   : > { %1817 = vmatpush1.bf16.msra.mxu0 %v4081_v10  ;;  %2269 = vmatpush1.bf16.msra.mxu1 %v4082_v11  ;;  %v4109_v29 = vld [vmem:[%s5539_s1 + $0xec] ss:$16 sps:$4 sm:$0xff]   ;;  %s3316_s17 = sshll.u32 %s4625_s22, 4  ;;  %v4111_v30 = vld [vmem:[%s5539_s1 + $0xe0] ss:$16 sps:$4 sm:$0xff]   ;;  %vm1787_vm0 = vcmask 130048  }
  0x3f   : > { %1818 = vmatprep.subr.bf16.mxu0 %v4083_v12  ;;  %2270 = vmatprep.subr.bf16.mxu1 %v4085_v13  ;;  %v4112_v31 = vld [vmem:[%s5539_s1 + $0xe8] ss:$16 sps:$4 sm:$0xff]   ;;  %v4113_v32 = vld [vmem:[%s5539_s1 + $0x104] ss:$16 sps:$4 sm:$0xff]   ;;  %p237_p5 = scmp.lt.s32.totalorder %s3316_s17, 31  ;;  %s3624_s13 = sshll.u32 %s4625_s22, 11 }
  0x40   : > { %v4115_v33 = vld [vmem:[%s5539_s1 + $0x10c] ss:$16 sps:$4 sm:$0xff]   ;;  %v4117_v34 = vld [vmem:[%s5539_s1 + $0x100] ss:$16 sps:$4 sm:$0xff]   ;;  %v4118_v35 = vld [vmem:[%s5539_s1 + $0x108] ss:$16 sps:$4 sm:$0xff]   ;;  %s5489_s23 = scalar_lea.hbm %s5543_s5, %s3624_s13 }
  0x41   : > { %v4119_v36 = vld [vmem:[%s5539_s1 + $0x124] ss:$16 sps:$4 sm:$0xff]   ;;  %s5561_s17 = smov (!%p237_p5, %s3316_s17), 31  ;;  %v4121_v37 = vld [vmem:[%s5539_s1 + $0x12c] ss:$16 sps:$4 sm:$0xff]   ;;  %p5554_p9 = scmp.ne.s32.totalorder %s5547_s28, 0 }
  0x42   : > { %1819 = vmatpush1.bf16.msra.mxu0 %v4087_v14  ;;  %2271 = vmatpush1.bf16.msra.mxu1 %v4088_v15  ;;  %v4123_v38 = vld [vmem:[%s5539_s1 + $0x120] ss:$16 sps:$4 sm:$0xff]   ;;  %v4124_v39 = vld [vmem:[%s5539_s1 + $0x128] ss:$16 sps:$4 sm:$0xff]   ;;  %v4125_v40 = vld [vmem:[%s5539_s1 + $0x144] ss:$16 sps:$4 sm:$0xff]  }
  0x43   : > { %1820 = vmatprep.subr.bf16.mxu0 %v4089_v16  ;;  %2272 = vmatprep.subr.bf16.mxu1 %v4091_v17  ;;  %s4009_s8 = smul.u32 28, %s5561_s17  ;;  %v4127_v41 = vld [vmem:[%s5539_s1 + $0x14c] ss:$16 sps:$4 sm:$0xff]   ;;  %v4129_v42 = vld [vmem:[%s5539_s1 + $0x140] ss:$16 sps:$4 sm:$0xff]   ;;  %s4571_s25 = smov [#allocation5]  }
  0x44   : > { %v4130_v43 = vld [vmem:[%s5539_s1 + $0x148] ss:$16 sps:$4 sm:$0xff]   ;;  %v4131_v44 = vld [vmem:[%s5539_s1 + $0x164] ss:$16 sps:$4 sm:$0xff]   ;;  %v4133_v45 = vld [vmem:[%s5539_s1 + $0x16c] ss:$16 sps:$4 sm:$0xff]  }
  0x45   : > { %s4826_s26 = scalar_lea.vmem %s5538_s0, %s4009_s8  ;;  %v4135_v46 = vld [vmem:[%s5539_s1 + $0x160] ss:$16 sps:$4 sm:$0xff]   ;;  %v4136_v47 = vld [vmem:[%s5539_s1 + $0x168] ss:$16 sps:$4 sm:$0xff]   ;;  %v4137_v49 = vld [vmem:[%s5539_s1 + $0x184] ss:$16 sps:$4 sm:$0xff]  }
  0x46   : > { %1821 = vmatpush1.bf16.msra.mxu0 %v4093_v18  ;;  %2273 = vmatpush1.bf16.msra.mxu1 %v4094_v19  ;;  %v4163_v48 = vld [vmem:[%s4826_s26 + $0x4] ss:$28 sps:$4 sm:$0xff]   ;;  %v4139_v50 = vld [vmem:[%s5539_s1 + $0x18c] ss:$16 sps:$4 sm:$0xff]   ;;  %v4142_v52 = vld [vmem:[%s5539_s1 + $0x188] ss:$16 sps:$4 sm:$0xff]  }
  0x47   : > { %1822 = vmatprep.subr.bf16.mxu0 %v4095_v20  ;;  %2274 = vmatprep.subr.bf16.mxu1 %v4097_v21  ;;  %v4141_v51 = vld [vmem:[%s5539_s1 + $0x180] ss:$16 sps:$4 sm:$0xff]   ;;  %v4143_v53 = vld [vmem:[%s5539_s1 + $0x1a4] ss:$16 sps:$4 sm:$0xff]   ;;  %v4145_v54 = vld [vmem:[%s5539_s1 + $0x1ac] ss:$16 sps:$4 sm:$0xff]  }
  0x48   : > { %1844 = vmatprep.mubr.bf16.mxu0 %v4163_v48  ;;  %2296 = vmatprep.mubr.bf16.mxu1 %v4163_v48  ;;  %v4147_v55 = vld [vmem:[%s5539_s1 + $0x1a0] ss:$16 sps:$4 sm:$0xff]   ;;  %v4148_v56 = vld [vmem:[%s5539_s1 + $0x1a8] ss:$16 sps:$4 sm:$0xff]   ;;  %v4149_v57 = vld [vmem:[%s5539_s1 + $0x1c4] ss:$16 sps:$4 sm:$0xff]  }
  0x49   : > { %v4151_v58 = vld [vmem:[%s5539_s1 + $0x1cc] ss:$16 sps:$4 sm:$0xff]   ;;  %v4153_v59 = vld [vmem:[%s5539_s1 + $0x1c0] ss:$16 sps:$4 sm:$0xff]   ;;  %v4154_v60 = vld [vmem:[%s5539_s1 + $0x1c8] ss:$16 sps:$4 sm:$0xff]  }
  0x4a   : > { %1823 = vmatpush1.bf16.msra.mxu0 %v4099_v22  ;;  %2275 = vmatpush1.bf16.msra.mxu1 %v4100_v23  ;;  %v4155_v61 = vld [vmem:[%s5539_s1 + $0x1e4] ss:$16 sps:$4 sm:$0xff]   ;;  %v4157_v62 = vld [vmem:[%s5539_s1 + $0x1ec] ss:$16 sps:$4 sm:$0xff]   ;;  %v4159_v63 = vld [vmem:[%s5539_s1 + $0x1e0] ss:$16 sps:$4 sm:$0xff]  }
  0x4b   : > { %1824 = vmatprep.subr.bf16.mxu0 %v4101_v24  ;;  %2276 = vmatprep.subr.bf16.mxu1 %v4103_v25  ;;  %v4160_v0 = vld [vmem:[%s5539_s1 + $0x1e8] ss:$16 sps:$4 sm:$0xff]   ;;  %v4166_v1 = vld [vmem:[%s5539_s1 + $0x204] ss:$16 sps:$4 sm:$0xff]   ;;  %v4169_v2 = vld [vmem:[%s5539_s1 + $0x20c] ss:$16 sps:$4 sm:$0xff]  }
  0x4c   : > { %v4161_v3 = vld [vmem:[%s4826_s26] ss:$28 sps:$4 sm:$0xff]   ;;  %v4167_v5 = vld [vmem:[%s5539_s1 + $0x208] ss:$16 sps:$4 sm:$0xff]   ;;  %v4172_v6 = vld [vmem:[%s5539_s1 + $0x224] ss:$16 sps:$4 sm:$0xff]  }
  0x4d   : > { %v4164_v4 = vld [vmem:[%s5539_s1 + $0x200] ss:$16 sps:$4 sm:$0xff]   ;;  %v4175_v7 = vld [vmem:[%s5539_s1 + $0x22c] ss:$16 sps:$4 sm:$0xff]   ;;  %v4173_v10 = vld [vmem:[%s5539_s1 + $0x228] ss:$16 sps:$4 sm:$0xff]  }
  0x4e   : > { %1825 = vmatpush1.bf16.msra.mxu0 %v4105_v26  ;;  %2277 = vmatpush1.bf16.msra.mxu1 %v4106_v27  ;;  %v4176_v8 = vld [vmem:[%s4826_s26 + $0x3c] ss:$28 sps:$4 sm:$0xff]   ;;  %v4170_v9 = vld [vmem:[%s5539_s1 + $0x220] ss:$16 sps:$4 sm:$0xff]   ;;  %v4181_v11 = vld [vmem:[%s5539_s1 + $0x244] ss:$16 sps:$4 sm:$0xff]  }
  0x4f   : > { %1826 = vmatprep.subr.bf16.mxu0 %v4107_v28  ;;  %2278 = vmatprep.subr.bf16.mxu1 %v4109_v29  ;;  %v4184_v12 = vld [vmem:[%s5539_s1 + $0x24c] ss:$16 sps:$4 sm:$0xff]   ;;  %v4178_v13 = vld [vmem:[%s4826_s26 + $0x38] ss:$28 sps:$4 sm:$0xff]   ;;  %v4179_v14 = vld [vmem:[%s5539_s1 + $0x240] ss:$16 sps:$4 sm:$0xff]  }
  0x50   : > { %v4182_v15 = vld [vmem:[%s5539_s1 + $0x248] ss:$16 sps:$4 sm:$0xff]   ;;  %v4187_v16 = vld [vmem:[%s5539_s1 + $0x264] ss:$16 sps:$4 sm:$0xff]   ;;  %v4190_v17 = vld [vmem:[%s5539_s1 + $0x26c] ss:$16 sps:$4 sm:$0xff]  }
  0x51   : > { %v4191_v18 = vld [vmem:[%s4826_s26 + $0x74] ss:$28 sps:$4 sm:$0xff]   ;;  %v4188_v20 = vld [vmem:[%s5539_s1 + $0x268] ss:$16 sps:$4 sm:$0xff]   ;;  %v4199_v22 = vld [vmem:[%s5539_s1 + $0x28c] ss:$16 sps:$4 sm:$0xff]  }
  0x52   : > { %1827 = vmatpush1.bf16.msra.mxu0 %v4111_v30  ;;  %2279 = vmatpush1.bf16.msra.mxu1 %v4112_v31  ;;  %v4185_v19 = vld [vmem:[%s5539_s1 + $0x260] ss:$16 sps:$4 sm:$0xff]   ;;  %v4196_v21 = vld [vmem:[%s5539_s1 + $0x284] ss:$16 sps:$4 sm:$0xff]   ;;  %v4197_v25 = vld [vmem:[%s5539_s1 + $0x288] ss:$16 sps:$4 sm:$0xff]  }
  0x53   : > { %1828 = vmatprep.subr.bf16.mxu0 %v4113_v32  ;;  %2280 = vmatprep.subr.bf16.mxu1 %v4115_v33  ;;  %v4193_v23 = vld [vmem:[%s4826_s26 + $0x70] ss:$28 sps:$4 sm:$0xff]   ;;  %v4202_v26 = vld [vmem:[%s5539_s1 + $0x2a4] ss:$16 sps:$4 sm:$0xff]   ;;  %v4203_v30 = vld [vmem:[%s5539_s1 + $0x2a8] ss:$16 sps:$4 sm:$0xff]  }
  0x54   : > { %v4194_v24 = vld [vmem:[%s5539_s1 + $0x280] ss:$16 sps:$4 sm:$0xff]   ;;  %v4205_v27 = vld [vmem:[%s5539_s1 + $0x2ac] ss:$16 sps:$4 sm:$0xff]   ;;  %v4211_v31 = vld [vmem:[%s5539_s1 + $0x2c4] ss:$16 sps:$4 sm:$0xff]  }
  0x55   : > { %v4206_v28 = vld [vmem:[%s4826_s26 + $0xac] ss:$28 sps:$4 sm:$0xff]   ;;  %v4200_v29 = vld [vmem:[%s5539_s1 + $0x2a0] ss:$16 sps:$4 sm:$0xff]   ;;  %v4236_v48 = vld [vmem:[%s4826_s26 + $0x11c] ss:$28 sps:$4 sm:$0xff]  }
  0x56   : > { %1829 = vmatpush1.bf16.msra.mxu0 %v4117_v34  ;;  %2281 = vmatpush1.bf16.msra.mxu1 %v4118_v35  ;;  %v4214_v32 = vld [vmem:[%s5539_s1 + $0x2cc] ss:$16 sps:$4 sm:$0xff]   ;;  %v4208_v33 = vld [vmem:[%s4826_s26 + $0xa8] ss:$28 sps:$4 sm:$0xff]   ;;  %v4209_v34 = vld [vmem:[%s5539_s1 + $0x2c0] ss:$16 sps:$4 sm:$0xff]  }
  0x57   : > { %1830 = vmatprep.subr.bf16.mxu0 %v4119_v36  ;;  %2282 = vmatprep.subr.bf16.mxu1 %v4121_v37  ;;  %v4212_v35 = vld [vmem:[%s5539_s1 + $0x2c8] ss:$16 sps:$4 sm:$0xff]   ;;  %v4217_v36 = vld [vmem:[%s5539_s1 + $0x2e4] ss:$16 sps:$4 sm:$0xff]   ;;  %v4220_v37 = vld [vmem:[%s5539_s1 + $0x2ec] ss:$16 sps:$4 sm:$0xff]  }
  0x58   : > { %s4503_s6 = sshll.u32 %s4571_s25, 4  ;;  %s4504_s6 = int_to_ptr.vmem [resolvable:$false] %s4503_s6 }
  0x59   : > { %s4505_s9 = scalar_lea.vmem %s4504_s6, 4096 }
  0x5a   : > { %1831 = vmatpush1.bf16.msra.mxu0 %v4123_v38  ;;  %2283 = vmatpush1.bf16.msra.mxu1 %v4124_v39  ;;  %v4221_v38 = vld [vmem:[%s4826_s26 + $0xe4] ss:$28 sps:$4 sm:$0xff]  }
  0x5b   : > { %1832 = vmatprep.subr.bf16.mxu0 %v4125_v40  ;;  %2284 = vmatprep.subr.bf16.mxu1 %v4127_v41  ;;  %v4215_v39 = vld [vmem:[%s5539_s1 + $0x2e0] ss:$16 sps:$4 sm:$0xff]   ;;  %v4218_v40 = vld [vmem:[%s5539_s1 + $0x2e8] ss:$16 sps:$4 sm:$0xff]   ;;  %v4226_v41 = vld [vmem:[%s5539_s1 + $0x304] ss:$16 sps:$4 sm:$0xff]  }
  0x5e   : > { %1833 = vmatpush1.bf16.msra.mxu0 %v4129_v42  ;;  %2285 = vmatpush1.bf16.msra.mxu1 %v4130_v43  ;;  %v4229_v42 = vld [vmem:[%s5539_s1 + $0x30c] ss:$16 sps:$4 sm:$0xff]  }
  0x5f   : > { %1834 = vmatprep.subr.bf16.mxu0 %v4131_v44  ;;  %2286 = vmatprep.subr.bf16.mxu1 %v4133_v45  ;;  %v4223_v43 = vld [vmem:[%s4826_s26 + $0xe0] ss:$28 sps:$4 sm:$0xff]   ;;  %v4227_v45 = vld [vmem:[%s5539_s1 + $0x308] ss:$16 sps:$4 sm:$0xff]  }
  0x60   : > { %v4224_v44 = vld [vmem:[%s5539_s1 + $0x300] ss:$16 sps:$4 sm:$0xff]  }
  0x62   : > { %1835 = vmatpush1.bf16.msra.mxu0 %v4135_v46  ;;  %2287 = vmatpush1.bf16.msra.mxu1 %v4136_v47  ;;  %v4232_v46 = vld [vmem:[%s5539_s1 + $0x324] ss:$16 sps:$4 sm:$0xff]   ;;  %v4235_v47 = vld [vmem:[%s5539_s1 + $0x32c] ss:$16 sps:$4 sm:$0xff]  }
  0x63   : > { %1836 = vmatprep.subr.bf16.mxu0 %v4137_v49  ;;  %2288 = vmatprep.subr.bf16.mxu1 %v4139_v50  ;;  %v4230_v49 = vld [vmem:[%s5539_s1 + $0x320] ss:$16 sps:$4 sm:$0xff]   ;;  %v4233_v50 = vld [vmem:[%s5539_s1 + $0x328] ss:$16 sps:$4 sm:$0xff]  }
  0x66   : > { %1837 = vmatpush1.bf16.msra.mxu0 %v4141_v51  ;;  %2289 = vmatpush1.bf16.msra.mxu1 %v4142_v52  ;;  %v4241_v51 = vld [vmem:[%s5539_s1 + $0x344] ss:$16 sps:$4 sm:$0xff]   ;;  %v4244_v52 = vld [vmem:[%s5539_s1 + $0x34c] ss:$16 sps:$4 sm:$0xff]  }
  0x67   : > { %1838 = vmatprep.subr.bf16.mxu0 %v4143_v53  ;;  %2290 = vmatprep.subr.bf16.mxu1 %v4145_v54  ;;  %v4238_v53 = vld [vmem:[%s4826_s26 + $0x118] ss:$28 sps:$4 sm:$0xff]   ;;  %v4239_v54 = vld [vmem:[%s5539_s1 + $0x340] ss:$16 sps:$4 sm:$0xff]  }
  0x6a   : > { %1839 = vmatpush1.bf16.msra.mxu0 %v4147_v55  ;;  %2291 = vmatpush1.bf16.msra.mxu1 %v4148_v56  ;;  %v4242_v55 = vld [vmem:[%s5539_s1 + $0x348] ss:$16 sps:$4 sm:$0xff]   ;;  %v4247_v56 = vld [vmem:[%s5539_s1 + $0x364] ss:$16 sps:$4 sm:$0xff]  }
  0x6b   : > { %1840 = vmatprep.subr.bf16.mxu0 %v4149_v57  ;;  %2292 = vmatprep.subr.bf16.mxu1 %v4151_v58  ;;  %v4250_v57 = vld [vmem:[%s5539_s1 + $0x36c] ss:$16 sps:$4 sm:$0xff]   ;;  %v4251_v58 = vld [vmem:[%s4826_s26 + $0x154] ss:$28 sps:$4 sm:$0xff]  }
  0x6e   : > { %1841 = vmatpush1.bf16.msra.mxu0 %v4153_v59  ;;  %2293 = vmatpush1.bf16.msra.mxu1 %v4154_v60  ;;  %v4245_v59 = vld [vmem:[%s5539_s1 + $0x360] ss:$16 sps:$4 sm:$0xff]   ;;  %v4248_v60 = vld [vmem:[%s5539_s1 + $0x368] ss:$16 sps:$4 sm:$0xff]  }
  0x6f   : > { %1842 = vmatprep.subr.bf16.mxu0 %v4155_v61  ;;  %2294 = vmatprep.subr.bf16.mxu1 %v4157_v62  ;;  %v4256_v61 = vld [vmem:[%s5539_s1 + $0x384] ss:$16 sps:$4 sm:$0xff]   ;;  %v4259_v62 = vld [vmem:[%s5539_s1 + $0x38c] ss:$16 sps:$4 sm:$0xff]  }
  0x72   : > { %1843 = vmatpush1.bf16.msra.mxu0 %v4159_v63  ;;  %2295 = vmatpush1.bf16.msra.mxu1 %v4160_v0  ;;  %v4253_v63 = vld [vmem:[%s4826_s26 + $0x150] ss:$28 sps:$4 sm:$0xff]  }
  0x73   : > { %1925 = vmatprep.subr.bf16.mxu0 %v4166_v1  ;;  %2377 = vmatprep.subr.bf16.mxu1 %v4169_v2  ;;  %v4254_v0 = vld [vmem:[%s5539_s1 + $0x380] ss:$16 sps:$4 sm:$0xff]   ;;  %v4257_v1 = vld [vmem:[%s5539_s1 + $0x388] ss:$16 sps:$4 sm:$0xff]   ;;  %v4262_v2 = vld [vmem:[%s5539_s1 + $0x3a4] ss:$16 sps:$4 sm:$0xff]  }
  0x75   : > { %1845 = vmatmul.mubr.bf16.vlgmr.msra.gmra.mrb[0].mxu0 %v4161_v3  ;;  %2297 = vmatmul.mubr.bf16.vlgmr.msra.gmra.mrb[0].mxu1 %v4161_v3  ;;  %v4265_v3 = vld [vmem:[%s5539_s1 + $0x3ac] ss:$16 sps:$4 sm:$0xff]  }
  0x76   : > { %1926 = vmatpush1.bf16.msra.mxu0 %v4164_v4  ;;  %2378 = vmatpush1.bf16.msra.mxu1 %v4167_v5  ;;  %v4266_v4 = vld [vmem:[%s4826_s26 + $0x18c] ss:$28 sps:$4 sm:$0xff]   ;;  %v4260_v5 = vld [vmem:[%s5539_s1 + $0x3a0] ss:$16 sps:$4 sm:$0xff]  }
  0x77   : > { %1927 = vmatprep.subr.bf16.mxu0 %v4172_v6  ;;  %2379 = vmatprep.subr.bf16.mxu1 %v4175_v7  ;;  %v4263_v6 = vld [vmem:[%s5539_s1 + $0x3a8] ss:$16 sps:$4 sm:$0xff]   ;;  %v4271_v7 = vld [vmem:[%s5539_s1 + $0x3c4] ss:$16 sps:$4 sm:$0xff]  }
  0x78   : > { %1854 = vmatprep.mubr.bf16.mxu0 %v4176_v8  ;;  %2306 = vmatprep.mubr.bf16.mxu1 %v4176_v8  ;;  %v4274_v8 = vld [vmem:[%s5539_s1 + $0x3cc] ss:$16 sps:$4 sm:$0xff]  }
  0x7a   : > { %1928 = vmatpush1.bf16.msra.mxu0 %v4170_v9  ;;  %2380 = vmatpush1.bf16.msra.mxu1 %v4173_v10  ;;  %v4268_v9 = vld [vmem:[%s4826_s26 + $0x188] ss:$28 sps:$4 sm:$0xff]   ;;  %v4269_v10 = vld [vmem:[%s5539_s1 + $0x3c0] ss:$16 sps:$4 sm:$0xff]  }
  0x7b   : > { %1929 = vmatprep.subr.bf16.mxu0 %v4181_v11  ;;  %2381 = vmatprep.subr.bf16.mxu1 %v4184_v12  ;;  %v4272_v11 = vld [vmem:[%s5539_s1 + $0x3c8] ss:$16 sps:$4 sm:$0xff]   ;;  %v4277_v12 = vld [vmem:[%s5539_s1 + $0x3e4] ss:$16 sps:$4 sm:$0xff]  }
  0x7d   : > { %1855 = vmatmul.mubr.bf16.gmra.mrb[4].mxu0 %v4178_v13  ;;  %2307 = vmatmul.mubr.bf16.gmra.mrb[4].mxu1 %v4178_v13  ;;  %v4280_v13 = vld [vmem:[%s5539_s1 + $0x3ec] ss:$16 sps:$4 sm:$0xff]  }
  0x7e   : > { %1930 = vmatpush1.bf16.msra.mxu0 %v4179_v14  ;;  %2382 = vmatpush1.bf16.msra.mxu1 %v4182_v15  ;;  %v4283_v14 = vld [vmem:[%s4826_s26 + $0xc] ss:$28 sps:$4 sm:$0xff]   ;;  %v4275_v15 = vld [vmem:[%s5539_s1 + $0x3e0] ss:$16 sps:$4 sm:$0xff]  }
  0x7f   : > { %1931 = vmatprep.subr.bf16.mxu0 %v4187_v16  ;;  %2383 = vmatprep.subr.bf16.mxu1 %v4190_v17  ;;  %v4278_v16 = vld [vmem:[%s5539_s1 + $0x3e8] ss:$16 sps:$4 sm:$0xff]   ;;  %v4286_v17 = vld [vmem:[%s5539_s1 + $0x404] ss:$16 sps:$4 sm:$0xff]  }
  0x80   : > { %1864 = vmatprep.mubr.bf16.mxu0 %v4191_v18  ;;  %2316 = vmatprep.mubr.bf16.mxu1 %v4191_v18  ;;  %v4289_v18 = vld [vmem:[%s5539_s1 + $0x40c] ss:$16 sps:$4 sm:$0xff]  }
  0x82   : > { %1932 = vmatpush1.bf16.msra.mxu0 %v4185_v19  ;;  %2384 = vmatpush1.bf16.msra.mxu1 %v4188_v20  ;;  %v4281_v19 = vld [vmem:[%s4826_s26 + $0x8] ss:$28 sps:$4 sm:$0xff]   ;;  %v4284_v20 = vld [vmem:[%s5539_s1 + $0x400] ss:$16 sps:$4 sm:$0xff]  }
  0x83   : > { %1933 = vmatprep.subr.bf16.mxu0 %v4196_v21  ;;  %2385 = vmatprep.subr.bf16.mxu1 %v4199_v22  ;;  %v4287_v21 = vld [vmem:[%s5539_s1 + $0x408] ss:$16 sps:$4 sm:$0xff]   ;;  %v4292_v22 = vld [vmem:[%s5539_s1 + $0x424] ss:$16 sps:$4 sm:$0xff]  }
  0x85   : > { %1865 = vmatmul.mubr.bf16.gmra.mrb[8].mxu0 %v4193_v23  ;;  %2317 = vmatmul.mubr.bf16.gmra.mrb[8].mxu1 %v4193_v23  ;;  %v4295_v23 = vld [vmem:[%s5539_s1 + $0x42c] ss:$16 sps:$4 sm:$0xff]  }
  0x86   : > { %1934 = vmatpush1.bf16.msra.mxu0 %v4194_v24  ;;  %2386 = vmatpush1.bf16.msra.mxu1 %v4197_v25  ;;  %v4296_v24 = vld [vmem:[%s4826_s26 + $0x44] ss:$28 sps:$4 sm:$0xff]  }
  0x87   : > { %1935 = vmatprep.subr.bf16.mxu0 %v4202_v26  ;;  %2387 = vmatprep.subr.bf16.mxu1 %v4205_v27  ;;  %v4290_v25 = vld [vmem:[%s5539_s1 + $0x420] ss:$16 sps:$4 sm:$0xff]   ;;  %v4293_v26 = vld [vmem:[%s5539_s1 + $0x428] ss:$16 sps:$4 sm:$0xff]   ;;  %v4301_v27 = vld [vmem:[%s5539_s1 + $0x444] ss:$16 sps:$4 sm:$0xff]  }
  0x88   : > { %1874 = vmatprep.mubr.bf16.mxu0 %v4206_v28  ;;  %2326 = vmatprep.mubr.bf16.mxu1 %v4206_v28  ;;  %v4304_v28 = vld [vmem:[%s5539_s1 + $0x44c] ss:$16 sps:$4 sm:$0xff]  }
  0x8a   : > { %1936 = vmatpush1.bf16.msra.mxu0 %v4200_v29  ;;  %2388 = vmatpush1.bf16.msra.mxu1 %v4203_v30  ;;  %v4298_v29 = vld [vmem:[%s4826_s26 + $0x40] ss:$28 sps:$4 sm:$0xff]  }
  0x8b   : > { %1937 = vmatprep.subr.bf16.mxu0 %v4211_v31  ;;  %2389 = vmatprep.subr.bf16.mxu1 %v4214_v32  ;;  %v4299_v30 = vld [vmem:[%s5539_s1 + $0x440] ss:$16 sps:$4 sm:$0xff]   ;;  %v4302_v31 = vld [vmem:[%s5539_s1 + $0x448] ss:$16 sps:$4 sm:$0xff]   ;;  %v4307_v32 = vld [vmem:[%s5539_s1 + $0x464] ss:$16 sps:$4 sm:$0xff]  }
  0x8d   : > { %1875 = vmatmul.mubr.bf16.gmra.mrb[12].mxu0 %v4208_v33  ;;  %2327 = vmatmul.mubr.bf16.gmra.mrb[12].mxu1 %v4208_v33  ;;  %v4310_v33 = vld [vmem:[%s5539_s1 + $0x46c] ss:$16 sps:$4 sm:$0xff]  }
  0x8e   : > { %1938 = vmatpush1.bf16.msra.mxu0 %v4209_v34  ;;  %2390 = vmatpush1.bf16.msra.mxu1 %v4212_v35  ;;  %v4311_v34 = vld [vmem:[%s4826_s26 + $0x7c] ss:$28 sps:$4 sm:$0xff]   ;;  %v4305_v35 = vld [vmem:[%s5539_s1 + $0x460] ss:$16 sps:$4 sm:$0xff]  }
  0x8f   : > { %1939 = vmatprep.subr.bf16.mxu0 %v4217_v36  ;;  %2391 = vmatprep.subr.bf16.mxu1 %v4220_v37  ;;  %v4308_v36 = vld [vmem:[%s5539_s1 + $0x468] ss:$16 sps:$4 sm:$0xff]   ;;  %v4316_v37 = vld [vmem:[%s5539_s1 + $0x484] ss:$16 sps:$4 sm:$0xff]  }
  0x90   : > { %1884 = vmatprep.mubr.bf16.mxu0 %v4221_v38  ;;  %2336 = vmatprep.mubr.bf16.mxu1 %v4221_v38  ;;  %v4319_v38 = vld [vmem:[%s5539_s1 + $0x48c] ss:$16 sps:$4 sm:$0xff]  }
  0x92   : > { %1940 = vmatpush1.bf16.msra.mxu0 %v4215_v39  ;;  %2392 = vmatpush1.bf16.msra.mxu1 %v4218_v40  ;;  %v4313_v39 = vld [vmem:[%s4826_s26 + $0x78] ss:$28 sps:$4 sm:$0xff]   ;;  %v4314_v40 = vld [vmem:[%s5539_s1 + $0x480] ss:$16 sps:$4 sm:$0xff]  }
  0x93   : > { %1941 = vmatprep.subr.bf16.mxu0 %v4226_v41  ;;  %2393 = vmatprep.subr.bf16.mxu1 %v4229_v42  ;;  %v4317_v41 = vld [vmem:[%s5539_s1 + $0x488] ss:$16 sps:$4 sm:$0xff]   ;;  %v4322_v42 = vld [vmem:[%s5539_s1 + $0x4a4] ss:$16 sps:$4 sm:$0xff]  }
  0x95   : > { %1885 = vmatmul.mubr.bf16.gmra.mrb[16].mxu0 %v4223_v43  ;;  %2337 = vmatmul.mubr.bf16.gmra.mrb[16].mxu1 %v4223_v43  ;;  %v4325_v43 = vld [vmem:[%s5539_s1 + $0x4ac] ss:$16 sps:$4 sm:$0xff]  }
  0x96   : > { %1942 = vmatpush1.bf16.msra.mxu0 %v4224_v44  ;;  %2394 = vmatpush1.bf16.msra.mxu1 %v4227_v45  ;;  %v4326_v44 = vld [vmem:[%s4826_s26 + $0xb4] ss:$28 sps:$4 sm:$0xff]  }
  0x97   : > { %1943 = vmatprep.subr.bf16.mxu0 %v4232_v46  ;;  %2395 = vmatprep.subr.bf16.mxu1 %v4235_v47  ;;  %v4320_v45 = vld [vmem:[%s5539_s1 + $0x4a0] ss:$16 sps:$4 sm:$0xff]   ;;  %v4323_v46 = vld [vmem:[%s5539_s1 + $0x4a8] ss:$16 sps:$4 sm:$0xff]   ;;  %v4331_v47 = vld [vmem:[%s5539_s1 + $0x4c4] ss:$16 sps:$4 sm:$0xff]  }
  0x98   : > { %1894 = vmatprep.mubr.bf16.mxu0 %v4236_v48  ;;  %2346 = vmatprep.mubr.bf16.mxu1 %v4236_v48  ;;  %v4334_v48 = vld [vmem:[%s5539_s1 + $0x4cc] ss:$16 sps:$4 sm:$0xff]  }
  0x9a   : > { %1944 = vmatpush1.bf16.msra.mxu0 %v4230_v49  ;;  %2396 = vmatpush1.bf16.msra.mxu1 %v4233_v50  ;;  %v4328_v49 = vld [vmem:[%s4826_s26 + $0xb0] ss:$28 sps:$4 sm:$0xff]  }
  0x9b   : > { %1945 = vmatprep.subr.bf16.mxu0 %v4241_v51  ;;  %2397 = vmatprep.subr.bf16.mxu1 %v4244_v52  ;;  %v4329_v50 = vld [vmem:[%s5539_s1 + $0x4c0] ss:$16 sps:$4 sm:$0xff]   ;;  %v4332_v51 = vld [vmem:[%s5539_s1 + $0x4c8] ss:$16 sps:$4 sm:$0xff]   ;;  %v4337_v52 = vld [vmem:[%s5539_s1 + $0x4e4] ss:$16 sps:$4 sm:$0xff]  }
  0x9d   : > { %1895 = vmatmul.mubr.bf16.gmra.mrb[20].mxu0 %v4238_v53  ;;  %2347 = vmatmul.mubr.bf16.gmra.mrb[20].mxu1 %v4238_v53  ;;  %v4340_v53 = vld [vmem:[%s5539_s1 + $0x4ec] ss:$16 sps:$4 sm:$0xff]  }
  0x9e   : > { %1946 = vmatpush1.bf16.msra.mxu0 %v4239_v54  ;;  %2398 = vmatpush1.bf16.msra.mxu1 %v4242_v55  ;;  %v4341_v54 = vld [vmem:[%s4826_s26 + $0xec] ss:$28 sps:$4 sm:$0xff]   ;;  %v4335_v55 = vld [vmem:[%s5539_s1 + $0x4e0] ss:$16 sps:$4 sm:$0xff]  }
  0x9f   : > { %1947 = vmatprep.subr.bf16.mxu0 %v4247_v56  ;;  %2399 = vmatprep.subr.bf16.mxu1 %v4250_v57  ;;  %v4338_v56 = vld [vmem:[%s5539_s1 + $0x4e8] ss:$16 sps:$4 sm:$0xff]   ;;  %v4346_v57 = vld [vmem:[%s5539_s1 + $0x504] ss:$16 sps:$4 sm:$0xff]  }
  0xa0   : > { %1904 = vmatprep.mubr.bf16.mxu0 %v4251_v58  ;;  %2356 = vmatprep.mubr.bf16.mxu1 %v4251_v58  ;;  %v4349_v58 = vld [vmem:[%s5539_s1 + $0x50c] ss:$16 sps:$4 sm:$0xff]  }
  0xa2   : > { %1948 = vmatpush1.bf16.msra.mxu0 %v4245_v59  ;;  %2400 = vmatpush1.bf16.msra.mxu1 %v4248_v60  ;;  %v4343_v59 = vld [vmem:[%s4826_s26 + $0xe8] ss:$28 sps:$4 sm:$0xff]   ;;  %v4344_v60 = vld [vmem:[%s5539_s1 + $0x500] ss:$16 sps:$4 sm:$0xff]  }
  0xa3   : > { %1949 = vmatprep.subr.bf16.mxu0 %v4256_v61  ;;  %2401 = vmatprep.subr.bf16.mxu1 %v4259_v62  ;;  %v4347_v61 = vld [vmem:[%s5539_s1 + $0x508] ss:$16 sps:$4 sm:$0xff]   ;;  %v4352_v62 = vld [vmem:[%s5539_s1 + $0x524] ss:$16 sps:$4 sm:$0xff]  }
  0xa5   : > { %1905 = vmatmul.mubr.bf16.gmra.mrb[24].mxu0 %v4253_v63  ;;  %2357 = vmatmul.mubr.bf16.gmra.mrb[24].mxu1 %v4253_v63  ;;  %v4355_v63 = vld [vmem:[%s5539_s1 + $0x52c] ss:$16 sps:$4 sm:$0xff]  }
  0xa6   : > { %1950 = vmatpush1.bf16.msra.mxu0 %v4254_v0  ;;  %2402 = vmatpush1.bf16.msra.mxu1 %v4257_v1  ;;  %v4350_v0 = vld [vmem:[%s5539_s1 + $0x520] ss:$16 sps:$4 sm:$0xff]  }
  0xa7   : > { %1951 = vmatprep.subr.bf16.mxu0 %v4262_v2  ;;  %2403 = vmatprep.subr.bf16.mxu1 %v4265_v3  ;;  %v4356_v1 = vld [vmem:[%s4826_s26 + $0x124] ss:$28 sps:$4 sm:$0xff]   ;;  %v4353_v2 = vld [vmem:[%s5539_s1 + $0x528] ss:$16 sps:$4 sm:$0xff]  }
  0xa8   : > { %1914 = vmatprep.mubr.bf16.mxu0 %v4266_v4  ;;  %2366 = vmatprep.mubr.bf16.mxu1 %v4266_v4  ;;  %v4361_v3 = vld [vmem:[%s5539_s1 + $0x544] ss:$16 sps:$4 sm:$0xff]   ;;  %v4358_v4 = vld [vmem:[%s4826_s26 + $0x120] ss:$28 sps:$4 sm:$0xff]  }
  0xaa   : > { %1952 = vmatpush1.bf16.msra.mxu0 %v4260_v5  ;;  %2404 = vmatpush1.bf16.msra.mxu1 %v4263_v6  ;;  %v4364_v5 = vld [vmem:[%s5539_s1 + $0x54c] ss:$16 sps:$4 sm:$0xff]   ;;  %v4359_v6 = vld [vmem:[%s5539_s1 + $0x540] ss:$16 sps:$4 sm:$0xff]  }
  0xab   : > { %1953 = vmatprep.subr.bf16.mxu0 %v4271_v7  ;;  %2405 = vmatprep.subr.bf16.mxu1 %v4274_v8  ;;  %v4362_v7 = vld [vmem:[%s5539_s1 + $0x548] ss:$16 sps:$4 sm:$0xff]   ;;  %v4367_v8 = vld [vmem:[%s5539_s1 + $0x564] ss:$16 sps:$4 sm:$0xff]  }
  0xad   : > { %1915 = vmatmul.mubr.bf16.gmra.mrb[28].mxu0 %v4268_v9  ;;  %2367 = vmatmul.mubr.bf16.gmra.mrb[28].mxu1 %v4268_v9  ;;  %v4370_v9 = vld [vmem:[%s5539_s1 + $0x56c] ss:$16 sps:$4 sm:$0xff]  }
  0xae   : > { %1954 = vmatpush1.bf16.msra.mxu0 %v4269_v10  ;;  %2406 = vmatpush1.bf16.msra.mxu1 %v4272_v11  ;;  %v4371_v10 = vld [vmem:[%s4826_s26 + $0x15c] ss:$28 sps:$4 sm:$0xff]   ;;  %v4365_v11 = vld [vmem:[%s5539_s1 + $0x560] ss:$16 sps:$4 sm:$0xff]  }
  0xaf   : > { %1955 = vmatprep.subr.bf16.mxu0 %v4277_v12  ;;  %2407 = vmatprep.subr.bf16.mxu1 %v4280_v13  ;;  %v4368_v12 = vld [vmem:[%s5539_s1 + $0x568] ss:$16 sps:$4 sm:$0xff]   ;;  %v4376_v13 = vld [vmem:[%s5539_s1 + $0x584] ss:$16 sps:$4 sm:$0xff]  }
  0xb0   : > { %1957 = vmatprep.mubr.bf16.mxu0 %v4283_v14  ;;  %2409 = vmatprep.mubr.bf16.mxu1 %v4283_v14  ;;  %v4379_v14 = vld [vmem:[%s5539_s1 + $0x58c] ss:$16 sps:$4 sm:$0xff]  }
  0xb2   : > { %1956 = vmatpush1.bf16.msra.mxu0 %v4275_v15  ;;  %2408 = vmatpush1.bf16.msra.mxu1 %v4278_v16  ;;  %v4373_v15 = vld [vmem:[%s4826_s26 + $0x158] ss:$28 sps:$4 sm:$0xff]   ;;  %v4374_v16 = vld [vmem:[%s5539_s1 + $0x580] ss:$16 sps:$4 sm:$0xff]  }
  0xb3   : > { %2038 = vmatprep.subr.bf16.mxu0 %v4286_v17  ;;  %2490 = vmatprep.subr.bf16.mxu1 %v4289_v18  ;;  %v4377_v17 = vld [vmem:[%s5539_s1 + $0x588] ss:$16 sps:$4 sm:$0xff]   ;;  %v4382_v18 = vld [vmem:[%s5539_s1 + $0x5a4] ss:$16 sps:$4 sm:$0xff]  }
  0xb5   : > { %1958 = vmatmul.mubr.bf16.vlgmr.msra.gmra.mrb[0].mxu0 %v4281_v19  ;;  %2410 = vmatmul.mubr.bf16.vlgmr.msra.gmra.mrb[0].mxu1 %v4281_v19  ;;  %v4385_v19 = vld [vmem:[%s5539_s1 + $0x5ac] ss:$16 sps:$4 sm:$0xff]  }
  0xb6   : > { %2039 = vmatpush1.bf16.msra.mxu0 %v4284_v20  ;;  %2491 = vmatpush1.bf16.msra.mxu1 %v4287_v21  ;;  %v4386_v20 = vld [vmem:[%s4826_s26 + $0x194] ss:$28 sps:$4 sm:$0xff]  }
  0xb7   : > { %2040 = vmatprep.subr.bf16.mxu0 %v4292_v22  ;;  %2492 = vmatprep.subr.bf16.mxu1 %v4295_v23  ;;  %v4380_v21 = vld [vmem:[%s5539_s1 + $0x5a0] ss:$16 sps:$4 sm:$0xff]   ;;  %v4383_v22 = vld [vmem:[%s5539_s1 + $0x5a8] ss:$16 sps:$4 sm:$0xff]   ;;  %v4391_v23 = vld [vmem:[%s5539_s1 + $0x5c4] ss:$16 sps:$4 sm:$0xff]  }
  0xb8   : > { %1967 = vmatprep.mubr.bf16.mxu0 %v4296_v24  ;;  %2419 = vmatprep.mubr.bf16.mxu1 %v4296_v24  ;;  %v4394_v24 = vld [vmem:[%s5539_s1 + $0x5cc] ss:$16 sps:$4 sm:$0xff]  }
  0xba   : > { %2041 = vmatpush1.bf16.msra.mxu0 %v4290_v25  ;;  %2493 = vmatpush1.bf16.msra.mxu1 %v4293_v26  ;;  %v4388_v25 = vld [vmem:[%s4826_s26 + $0x190] ss:$28 sps:$4 sm:$0xff]  }
  0xbb   : > { %2042 = vmatprep.subr.bf16.mxu0 %v4301_v27  ;;  %2494 = vmatprep.subr.bf16.mxu1 %v4304_v28  ;;  %v4389_v26 = vld [vmem:[%s5539_s1 + $0x5c0] ss:$16 sps:$4 sm:$0xff]   ;;  %v4392_v27 = vld [vmem:[%s5539_s1 + $0x5c8] ss:$16 sps:$4 sm:$0xff]   ;;  %v4397_v28 = vld [vmem:[%s5539_s1 + $0x5e4] ss:$16 sps:$4 sm:$0xff]  }
  0xbd   : > { %1968 = vmatmul.mubr.bf16.gmra.mrb[4].mxu0 %v4298_v29  ;;  %2420 = vmatmul.mubr.bf16.gmra.mrb[4].mxu1 %v4298_v29  ;;  %v4400_v29 = vld [vmem:[%s5539_s1 + $0x5ec] ss:$16 sps:$4 sm:$0xff]  }
  0xbe   : > { %2043 = vmatpush1.bf16.msra.mxu0 %v4299_v30  ;;  %2495 = vmatpush1.bf16.msra.mxu1 %v4302_v31  ;;  %v4403_v30 = vld [vmem:[%s4826_s26 + $0x14] ss:$28 sps:$4 sm:$0xff]  }
  0xbf   : > { %2044 = vmatprep.subr.bf16.mxu0 %v4307_v32  ;;  %2496 = vmatprep.subr.bf16.mxu1 %v4310_v33  ;;  %v4395_v31 = vld [vmem:[%s5539_s1 + $0x5e0] ss:$16 sps:$4 sm:$0xff]   ;;  %v4398_v32 = vld [vmem:[%s5539_s1 + $0x5e8] ss:$16 sps:$4 sm:$0xff]   ;;  %v4406_v33 = vld [vmem:[%s5539_s1 + $0x604] ss:$16 sps:$4 sm:$0xff]  }
  0xc0   : > { %1977 = vmatprep.mubr.bf16.mxu0 %v4311_v34  ;;  %2429 = vmatprep.mubr.bf16.mxu1 %v4311_v34  ;;  %v4409_v34 = vld [vmem:[%s5539_s1 + $0x60c] ss:$16 sps:$4 sm:$0xff]  }
  0xc2   : > { %2045 = vmatpush1.bf16.msra.mxu0 %v4305_v35  ;;  %2497 = vmatpush1.bf16.msra.mxu1 %v4308_v36  ;;  %v4401_v35 = vld [vmem:[%s4826_s26 + $0x10] ss:$28 sps:$4 sm:$0xff]  }
  0xc3   : > { %2046 = vmatprep.subr.bf16.mxu0 %v4316_v37  ;;  %2498 = vmatprep.subr.bf16.mxu1 %v4319_v38  ;;  %v4404_v36 = vld [vmem:[%s5539_s1 + $0x600] ss:$16 sps:$4 sm:$0xff]   ;;  %v4407_v37 = vld [vmem:[%s5539_s1 + $0x608] ss:$16 sps:$4 sm:$0xff]  }
  0xc4   : > { %v4410_v38 = vld [vmem:[%s4826_s26 + $0x4c] ss:$28 sps:$4 sm:$0xff]  }
  0xc5   : > { %1978 = vmatmul.mubr.bf16.gmra.mrb[8].mxu0 %v4313_v39  ;;  %2430 = vmatmul.mubr.bf16.gmra.mrb[8].mxu1 %v4313_v39  ;;  %v4439_v39 = vld [vmem:[#allocation2 + $0x40] sm:$0xff]  }
  0xc6   : > { %2047 = vmatpush1.bf16.msra.mxu0 %v4314_v40  ;;  %2499 = vmatpush1.bf16.msra.mxu1 %v4317_v41  ;;  %v4441_v40 = vld [vmem:[#allocation2 + $0xc0] sm:$0xff]  }
  0xc7   : > { %2048 = vmatprep.subr.bf16.mxu0 %v4322_v42  ;;  %2500 = vmatprep.subr.bf16.mxu1 %v4325_v43  ;;  %v4412_v41 = vld [vmem:[%s4826_s26 + $0x48] ss:$28 sps:$4 sm:$0xff]   ;;  %v4415_v43 = vld [vmem:[%s4826_s26 + $0x80] ss:$28 sps:$4 sm:$0xff]  }
  0xc8   : > { %1987 = vmatprep.mubr.bf16.mxu0 %v4326_v44  ;;  %2439 = vmatprep.mubr.bf16.mxu1 %v4326_v44  ;;  %v4413_v42 = vld [vmem:[%s4826_s26 + $0x84] ss:$28 sps:$4 sm:$0xff]   ;;  %v4416_v44 = vld [vmem:[%s4826_s26 + $0xbc] ss:$28 sps:$4 sm:$0xff]  }
  0xca   : > { %2049 = vmatpush1.bf16.msra.mxu0 %v4320_v45  ;;  %2501 = vmatpush1.bf16.msra.mxu1 %v4323_v46  ;;  %v4418_v45 = vld [vmem:[%s4826_s26 + $0xb8] ss:$28 sps:$4 sm:$0xff]  }
  0xcb   : > { %2050 = vmatprep.subr.bf16.mxu0 %v4331_v47  ;;  %2502 = vmatprep.subr.bf16.mxu1 %v4334_v48  ;;  %v4419_v46 = vld [vmem:[%s4826_s26 + $0xf4] ss:$28 sps:$4 sm:$0xff]   ;;  %v4422_v48 = vld [vmem:[%s4826_s26 + $0x12c] ss:$28 sps:$4 sm:$0xff]  }
  0xcc   : > { %v4421_v47 = vld [vmem:[%s4826_s26 + $0xf0] ss:$28 sps:$4 sm:$0xff]  }
  0xcd   : > { %1988 = vmatmul.mubr.bf16.gmra.mrb[12].mxu0 %v4328_v49  ;;  %2440 = vmatmul.mubr.bf16.gmra.mrb[12].mxu1 %v4328_v49  ;;  %v4424_v49 = vld [vmem:[%s4826_s26 + $0x128] ss:$28 sps:$4 sm:$0xff]  }
  0xce   : > { %2051 = vmatpush1.bf16.msra.mxu0 %v4329_v50  ;;  %2503 = vmatpush1.bf16.msra.mxu1 %v4332_v51  ;;  %v4425_v50 = vld [vmem:[%s4826_s26 + $0x164] ss:$28 sps:$4 sm:$0xff]  }
  0xcf   : > { %2052 = vmatprep.subr.bf16.mxu0 %v4337_v52  ;;  %2504 = vmatprep.subr.bf16.mxu1 %v4340_v53  ;;  %v4427_v51 = vld [vmem:[%s4826_s26 + $0x160] ss:$28 sps:$4 sm:$0xff]   ;;  %v4430_v53 = vld [vmem:[%s4826_s26 + $0x198] ss:$28 sps:$4 sm:$0xff]  }
  0xd0   : > { %1997 = vmatprep.mubr.bf16.mxu0 %v4341_v54  ;;  %2449 = vmatprep.mubr.bf16.mxu1 %v4341_v54  ;;  %v4428_v52 = vld [vmem:[%s4826_s26 + $0x19c] ss:$28 sps:$4 sm:$0xff]   ;;  %v4570_v54 = vmov 0  }
  0xd2   : > { %2053 = vmatpush1.bf16.msra.mxu0 %v4335_v55  ;;  %2505 = vmatpush1.bf16.msra.mxu1 %v4338_v56  ;;  %v4431_v55 = vld [vmem:[%s4826_s26 + $0x18] ss:$28 sps:$4 sm:$0xff]   ;;  %v4440_v56 = vld [vmem:[#allocation2] sm:$0xff]  }
  0xd3   : > { %2054 = vmatprep.subr.bf16.mxu0 %v4346_v57  ;;  %2506 = vmatprep.subr.bf16.mxu1 %v4349_v58  ;;  %v4442_v57 = vld [vmem:[#allocation2 + $0x80] sm:$0xff]   ;;  %v4443_v58 = vld [vmem:[#allocation2 + $0x48] sm:$0xff]  }
  0xd5   : > { %1998 = vmatmul.mubr.bf16.gmra.mrb[16].mxu0 %v4343_v59  ;;  %2450 = vmatmul.mubr.bf16.gmra.mrb[16].mxu1 %v4343_v59  ;;  %v4445_v59 = vld [vmem:[#allocation2 + $0xc8] sm:$0xff]  }
  0xd6   : > { %2055 = vmatpush1.bf16.msra.mxu0 %v4344_v60  ;;  %2507 = vmatpush1.bf16.msra.mxu1 %v4347_v61  ;;  %v4444_v60 = vld [vmem:[#allocation2 + $0x8] sm:$0xff]  }
  0xd7   : > { %2056 = vmatprep.subr.bf16.mxu0 %v4352_v62  ;;  %2508 = vmatprep.subr.bf16.mxu1 %v4355_v63  ;;  %v4446_v61 = vld [vmem:[#allocation2 + $0x88] sm:$0xff]   ;;  %v4447_v62 = vld [vmem:[#allocation2 + $0x50] sm:$0xff]  }
  0xd8   : > { %2007 = vmatprep.mubr.bf16.mxu0 %v4356_v1  ;;  %2459 = vmatprep.mubr.bf16.mxu1 %v4356_v1  ;;  %v4449_v63 = vld [vmem:[#allocation2 + $0xd0] sm:$0xff]  }
  0xd9   : > { %v4448_v1 = vld [vmem:[#allocation2 + $0x10] sm:$0xff]  }
  0xda   : > { %2057 = vmatpush1.bf16.msra.mxu0 %v4350_v0  ;;  %2509 = vmatpush1.bf16.msra.mxu1 %v4353_v2  ;;  %v4432_v0 = vld [vmem:[%s4826_s26 + $0x50] ss:$28 sps:$4 sm:$0xff]  }
  0xdb   : > { %2058 = vmatprep.subr.bf16.mxu0 %v4361_v3  ;;  %2510 = vmatprep.subr.bf16.mxu1 %v4364_v5  ;;  %v4450_v2 = vld [vmem:[#allocation2 + $0x90] sm:$0xff]   ;;  %v4451_v3 = vld [vmem:[#allocation2 + $0x58] sm:$0xff]  }
  0xdc   : > { %v4452_v5 = vld [vmem:[#allocation2 + $0x18] sm:$0xff]  }
  0xdd   : > { %2008 = vmatmul.mubr.bf16.gmra.mrb[20].mxu0 %v4358_v4  ;;  %2460 = vmatmul.mubr.bf16.gmra.mrb[20].mxu1 %v4358_v4  ;;  %v4453_v4 = vld [vmem:[#allocation2 + $0xd8] sm:$0xff]  }
  0xde   : > { %2059 = vmatpush1.bf16.msra.mxu0 %v4359_v6  ;;  %2511 = vmatpush1.bf16.msra.mxu1 %v4362_v7  ;;  %v4454_v6 = vld [vmem:[#allocation2 + $0x98] sm:$0xff]   ;;  %v4455_v7 = vld [vmem:[#allocation2 + $0x60] sm:$0xff]  }
  0xdf   : > { %2060 = vmatprep.subr.bf16.mxu0 %v4367_v8  ;;  %2512 = vmatprep.subr.bf16.mxu1 %v4370_v9  ;;  %v4457_v8 = vld [vmem:[#allocation2 + $0xe0] sm:$0xff]  }
  0xe0   : > { %2017 = vmatprep.mubr.bf16.mxu0 %v4371_v10  ;;  %2469 = vmatprep.mubr.bf16.mxu1 %v4371_v10  ;;  %v4433_v9 = vld [vmem:[%s4826_s26 + $0x88] ss:$28 sps:$4 sm:$0xff]  }
  0xe1   : > { %v4456_v10 = vld [vmem:[#allocation2 + $0x20] sm:$0xff]  }
  0xe2   : > { %2061 = vmatpush1.bf16.msra.mxu0 %v4365_v11  ;;  %2513 = vmatpush1.bf16.msra.mxu1 %v4368_v12  ;;  %v4458_v11 = vld [vmem:[#allocation2 + $0xa0] sm:$0xff]   ;;  %v4459_v12 = vld [vmem:[#allocation2 + $0x68] sm:$0xff]  }
  0xe3   : > { %2062 = vmatprep.subr.bf16.mxu0 %v4376_v13  ;;  %2514 = vmatprep.subr.bf16.mxu1 %v4379_v14  ;;  %v4461_v13 = vld [vmem:[#allocation2 + $0xe8] sm:$0xff]  }
  0xe4   : > { %v4460_v14 = vld [vmem:[#allocation2 + $0x28] sm:$0xff]  }
  0xe5   : > { %2018 = vmatmul.mubr.bf16.gmra.mrb[24].mxu0 %v4373_v15  ;;  %2470 = vmatmul.mubr.bf16.gmra.mrb[24].mxu1 %v4373_v15  ;;  %v4462_v15 = vld [vmem:[#allocation2 + $0xa8] sm:$0xff]  }
  0xe6   : > { %2063 = vmatpush1.bf16.msra.mxu0 %v4374_v16  ;;  %2515 = vmatpush1.bf16.msra.mxu1 %v4377_v17  ;;  %v4463_v16 = vld [vmem:[#allocation2 + $0x70] sm:$0xff]  }
  0xe7   : > { %2064 = vmatprep.subr.bf16.mxu0 %v4382_v18  ;;  %2516 = vmatprep.subr.bf16.mxu1 %v4385_v19  ;;  %v4465_v17 = vld [vmem:[#allocation2 + $0xf0] sm:$0xff]   ;;  %v4434_v18 = vld [vmem:[%s4826_s26 + $0xc0] ss:$28 sps:$4 sm:$0xff]  }
  0xe8   : > { %2027 = vmatprep.mubr.bf16.mxu0 %v4386_v20  ;;  %2479 = vmatprep.mubr.bf16.mxu1 %v4386_v20  ;;  %v4464_v19 = vld [vmem:[#allocation2 + $0x30] sm:$0xff]  }
  0xe9   : > { %v4466_v20 = vld [vmem:[#allocation2 + $0xb0] sm:$0xff]  }
  0xea   : > { %2065 = vmatpush1.bf16.msra.mxu0 %v4380_v21  ;;  %2517 = vmatpush1.bf16.msra.mxu1 %v4383_v22  ;;  %v4435_v21 = vld [vmem:[%s4826_s26 + $0xf8] ss:$28 sps:$4 sm:$0xff]   ;;  %v4436_v22 = vld [vmem:[%s4826_s26 + $0x130] ss:$28 sps:$4 sm:$0xff]  }
  0xeb   : > { %2066 = vmatprep.subr.bf16.mxu0 %v4391_v23  ;;  %2518 = vmatprep.subr.bf16.mxu1 %v4394_v24  ;;  %v4437_v23 = vld [vmem:[%s4826_s26 + $0x168] ss:$28 sps:$4 sm:$0xff]   ;;  %v4438_v24 = vld [vmem:[%s4826_s26 + $0x1a0] ss:$28 sps:$4 sm:$0xff]   ;;  %s233_s26 = sand.u32 1, %s4557_s19  }
  0xec   : > { %s3315_s8 = sshll.u32 %s233_s26, 7  ;;  %s5497_s17 = scalar_lea.sflag [#allocation4], %s233_s26 }
  0xed   : > { %2028 = vmatmul.mubr.bf16.gmra.mrb[28].mxu0 %v4388_v25  ;;  %2480 = vmatmul.mubr.bf16.gmra.mrb[28].mxu1 %v4388_v25  ;;  %v4467_v25 = vld [vmem:[#allocation2 + $0x78] sm:$0xff]   ;;  %s5454_s12 = scalar_lea.vmem [#allocation5], %s3315_s8 }
  0xee   : > { %2067 = vmatpush1.bf16.msra.mxu0 %v4389_v26  ;;  %2519 = vmatpush1.bf16.msra.mxu1 %v4392_v27  ;;  %v4469_v26 = vld [vmem:[#allocation2 + $0xf8] sm:$0xff]   ;;  %s3235_s14 = sshll.u32 %s5454_s12, 4  ;;  %s5491_s14 = int_to_ptr.vmem [resolvable:$true] %s3235_s14 }
  0xef   : > { %2068 = vmatprep.subr.bf16.mxu0 %v4397_v28  ;;  %2520 = vmatprep.subr.bf16.mxu1 %v4400_v29  ;;  %v4468_v27 = vld [vmem:[#allocation2 + $0x38] sm:$0xff]   ;;  %v507_v29 = vlaneseq  ;;  %s4499_s22 = scalar_lea.vmem %s5491_s14, 2048  ;;  %p4506_p2 = scmp.lt.s32.totalorder %s5491_s14, %s4504_s6 }
  0xf0   : > { %2070 = vmatprep.mubr.bf16.mxu0 %v4403_v30  ;;  %2522 = vmatprep.mubr.bf16.mxu1 %v4403_v30  ;;  %v4470_v28 = vld [vmem:[#allocation2 + $0xb8] sm:$0xff]   ;;  %p4500_p6 = scmp.ne.s32.totalorder %s5491_s14, %s4499_s22  ;;  %p4507_p3 = scmp.lt.s32.totalorder %s4505_s9, %s4499_s22 }
  0xf1   : > { %v508_v30 = vshrl.u32 %v507_v29, 7 }
  0xf2   : > { %2069 = vmatpush1.bf16.msra.mxu0 %v4395_v31  ;;  %2521 = vmatpush1.bf16.msra.mxu1 %v4398_v32  ;;  %p4501_p10 = pnand %p4500_p6, %p5554_p9  ;;  %p4508_p4 = por %p4507_p3, %p4506_p2 }
  0xf3   : > { %2151 = vmatprep.subr.bf16.mxu0 %v4406_v33  ;;  %2603 = vmatprep.subr.bf16.mxu1 %v4409_v34  ;;  %v509_v31 = vsub.s32 0, %v508_v30  ;;  %v517_v32 = vsub.s32 2, %v508_v30  ;;  %v505_v33 = vld [vmem:[%s5540_s2] sm:$0xf]  ;;  %v513_v34 = vsub.s32 1, %v508_v30 }
  0xf4   : > { %p4502_p12 = pneg %p4501_p10 }
  0xf5   : > { %2071 = vmatmul.mubr.bf16.vlgmr.msra.gmra.mrb[0].mxu0 %v4401_v35  ;;  %2523 = vmatmul.mubr.bf16.vlgmr.msra.gmra.mrb[0].mxu1 %v4401_v35  ;;  %v521_v35 = vsub.s32 3, %v508_v30 }
  0xf6   : > { %2152 = vmatpush1.bf16.msra.mxu0 %v4404_v36  ;;  %2604 = vmatpush1.bf16.msra.mxu1 %v4407_v37  ;;  %v5372_v36 = vrot.slane %v505_v33, %v509_v31  ;;  %v5374_v37 = vrot.slane %v505_v33, %v517_v32  ;;  %p4509_p7 = pnand %p4508_p4, %p4502_p12 }
  0xf7   : > { %2080 = vmatprep.mubr.bf16.mxu0 %v4410_v38  ;;  %2532 = vmatprep.mubr.bf16.mxu1 %v4410_v38 }
  0xf8   : > { %3625 = vmatprep.subr.bf16.mxu0 %v4439_v39  ;;  %3689 = vmatprep.subr.bf16.mxu1 %v4441_v40  ;;  %v5376_v40 = vrot.slane %v505_v33, %v513_v34 }
  0xfd   : > { %2081 = vmatmul.mubr.bf16.gmra.mrb[4].mxu0 %v4412_v41  ;;  %2533 = vmatmul.mubr.bf16.gmra.mrb[4].mxu1 %v4412_v41  ;;  %v5378_v41 = vrot.slane %v505_v33, %v521_v35 }
  0xfe   : > { %2090 = vmatprep.mubr.bf16.mxu0 %v4413_v42  ;;  %2542 = vmatprep.mubr.bf16.mxu1 %v4413_v42 }
 0x105   : > { %2091 = vmatmul.mubr.bf16.gmra.mrb[8].mxu0 %v4415_v43  ;;  %2543 = vmatmul.mubr.bf16.gmra.mrb[8].mxu1 %v4415_v43 }
 0x106   : > { %2100 = vmatprep.mubr.bf16.mxu0 %v4416_v44  ;;  %2552 = vmatprep.mubr.bf16.mxu1 %v4416_v44 }
 0x10d   : > { %2101 = vmatmul.mubr.bf16.gmra.mrb[12].mxu0 %v4418_v45  ;;  %2553 = vmatmul.mubr.bf16.gmra.mrb[12].mxu1 %v4418_v45 }
 0x10e   : > { %2110 = vmatprep.mubr.bf16.mxu0 %v4419_v46  ;;  %2562 = vmatprep.mubr.bf16.mxu1 %v4419_v46 }
 0x115   : > { %2111 = vmatmul.mubr.bf16.gmra.mrb[16].mxu0 %v4421_v47  ;;  %2563 = vmatmul.mubr.bf16.gmra.mrb[16].mxu1 %v4421_v47 }
 0x116   : > { %2120 = vmatprep.mubr.bf16.mxu0 %v4422_v48  ;;  %2572 = vmatprep.mubr.bf16.mxu1 %v4422_v48 }
 0x11d   : > { %2121 = vmatmul.mubr.bf16.gmra.mrb[20].mxu0 %v4424_v49  ;;  %2573 = vmatmul.mubr.bf16.gmra.mrb[20].mxu1 %v4424_v49 }
 0x11e   : > { %2130 = vmatprep.mubr.bf16.mxu0 %v4425_v50  ;;  %2582 = vmatprep.mubr.bf16.mxu1 %v4425_v50 }
 0x125   : > { %2131 = vmatmul.mubr.bf16.gmra.mrb[24].mxu0 %v4427_v51  ;;  %2583 = vmatmul.mubr.bf16.gmra.mrb[24].mxu1 %v4427_v51 }
 0x126   : > { %2140 = vmatprep.mubr.bf16.mxu0 %v4428_v52  ;;  %2592 = vmatprep.mubr.bf16.mxu1 %v4428_v52 }
 0x12d   : > { %2141 = vmatmul.mubr.bf16.gmra.mrb[28].mxu0 %v4430_v53  ;;  %2593 = vmatmul.mubr.bf16.gmra.mrb[28].mxu1 %v4430_v53 }
 0x12e   : > { %2183 = vmatprep.mubr.bf16.mxu0 %v4570_v54  ;;  %2635 = vmatprep.mubr.bf16.mxu1 %v4570_v54 }
 0x135   : > { %3570 = vmatmul.mubr.msk.bf16.vlgmr.msra.gmra.mrb[0].mxu0 %vm1787_vm0, %v4431_v55  ;;  %3578 = vmatmul.mubr.msk.bf16.vlgmr.msra.gmra.mrb[0].mxu1 %vm1787_vm0, %v4431_v55 }
 0x136   : > { %2193 = vmatprep.mubr.bf16.mxu0 %v4570_v54  ;;  %2645 = vmatprep.mubr.bf16.mxu1 %v4570_v54 }
 0x137   : > { %3626 = vmatpush3.bf16.msra.mxu0 %v4440_v56  ;;  %3690 = vmatpush3.bf16.msra.mxu1 %v4442_v57 }
 0x138   : > { %3627 = vmatprep.subr.bf16.mxu0 %v4443_v58  ;;  %3691 = vmatprep.subr.bf16.mxu1 %v4445_v59 }
 0x13b   : > { %3628 = vmatpush3.bf16.msra.mxu0 %v4444_v60  ;;  %3692 = vmatpush3.bf16.msra.mxu1 %v4446_v61 }
 0x13c   : > { %3629 = vmatprep.subr.bf16.mxu0 %v4447_v62  ;;  %3693 = vmatprep.subr.bf16.mxu1 %v4449_v63 }
 0x13d   : > { %3571 = vmatmul.mubr.msk.bf16.gmra.mrb[4].mxu0 %vm1787_vm0, %v4432_v0  ;;  %3579 = vmatmul.mubr.msk.bf16.gmra.mrb[4].mxu1 %vm1787_vm0, %v4432_v0 }
 0x13e   : > { %2203 = vmatprep.mubr.bf16.mxu0 %v4570_v54  ;;  %2655 = vmatprep.mubr.bf16.mxu1 %v4570_v54 }
 0x13f   : > { %3630 = vmatpush3.bf16.msra.mxu0 %v4448_v1  ;;  %3694 = vmatpush3.bf16.msra.mxu1 %v4450_v2 }
 0x140   : > { %3631 = vmatprep.subr.bf16.mxu0 %v4451_v3  ;;  %3695 = vmatprep.subr.bf16.mxu1 %v4453_v4 }
 0x143   : > { %3632 = vmatpush3.bf16.msra.mxu0 %v4452_v5  ;;  %3696 = vmatpush3.bf16.msra.mxu1 %v4454_v6 }
 0x144   : > { %3633 = vmatprep.subr.bf16.mxu0 %v4455_v7  ;;  %3697 = vmatprep.subr.bf16.mxu1 %v4457_v8 }
 0x145   : > { %3572 = vmatmul.mubr.msk.bf16.gmra.mrb[8].mxu0 %vm1787_vm0, %v4433_v9  ;;  %3580 = vmatmul.mubr.msk.bf16.gmra.mrb[8].mxu1 %vm1787_vm0, %v4433_v9 }
 0x146   : > { %2213 = vmatprep.mubr.bf16.mxu0 %v4570_v54  ;;  %2665 = vmatprep.mubr.bf16.mxu1 %v4570_v54 }
 0x147   : > { %3634 = vmatpush3.bf16.msra.mxu0 %v4456_v10  ;;  %3698 = vmatpush3.bf16.msra.mxu1 %v4458_v11 }
 0x148   : > { %3635 = vmatprep.subr.bf16.mxu0 %v4459_v12  ;;  %3699 = vmatprep.subr.bf16.mxu1 %v4461_v13 }
 0x14b   : > { %3636 = vmatpush3.bf16.msra.mxu0 %v4460_v14  ;;  %3700 = vmatpush3.bf16.msra.mxu1 %v4462_v15 }
 0x14c   : > { %3637 = vmatprep.subr.bf16.mxu0 %v4463_v16  ;;  %3701 = vmatprep.subr.bf16.mxu1 %v4465_v17 }
 0x14d   : > { %3573 = vmatmul.mubr.msk.bf16.gmra.mrb[12].mxu0 %vm1787_vm0, %v4434_v18  ;;  %3581 = vmatmul.mubr.msk.bf16.gmra.mrb[12].mxu1 %vm1787_vm0, %v4434_v18 }
 0x14e   : > { %2223 = vmatprep.mubr.bf16.mxu0 %v4570_v54  ;;  %2675 = vmatprep.mubr.bf16.mxu1 %v4570_v54 }
 0x14f   : > { %3638 = vmatpush3.bf16.msra.mxu0 %v4464_v19  ;;  %3702 = vmatpush3.bf16.msra.mxu1 %v4466_v20 }
 0x150   : > { %3639 = vmatprep.subr.bf16.mxu0 %v4467_v25  ;;  %3703 = vmatprep.subr.bf16.mxu1 %v4469_v26 }
 0x153   : > { %3640 = vmatpush3.bf16.msra.mxu0 %v4468_v27  ;;  %3704 = vmatpush3.bf16.msra.mxu1 %v4470_v28 }
 0x155   : > { %3574 = vmatmul.mubr.msk.bf16.gmra.mrb[16].mxu0 %vm1787_vm0, %v4435_v21  ;;  %3582 = vmatmul.mubr.msk.bf16.gmra.mrb[16].mxu1 %vm1787_vm0, %v4435_v21 }
 0x156   : > { %2233 = vmatprep.mubr.bf16.mxu0 %v4570_v54  ;;  %2685 = vmatprep.mubr.bf16.mxu1 %v4570_v54 }
 0x15d   : > { %3575 = vmatmul.mubr.msk.bf16.gmra.mrb[20].mxu0 %vm1787_vm0, %v4436_v22  ;;  %3583 = vmatmul.mubr.msk.bf16.gmra.mrb[20].mxu1 %vm1787_vm0, %v4436_v22 }
 0x15e   : > { %2243 = vmatprep.mubr.bf16.mxu0 %v4570_v54  ;;  %2695 = vmatprep.mubr.bf16.mxu1 %v4570_v54 }
 0x165   : > { %3576 = vmatmul.mubr.msk.bf16.gmra.mrb[24].mxu0 %vm1787_vm0, %v4437_v23  ;;  %3584 = vmatmul.mubr.msk.bf16.gmra.mrb[24].mxu1 %vm1787_vm0, %v4437_v23 }
 0x166   : > { %2253 = vmatprep.mubr.bf16.mxu0 %v4570_v54  ;;  %2705 = vmatprep.mubr.bf16.mxu1 %v4570_v54 }
 0x16d   : > { %3577 = vmatmul.mubr.msk.bf16.gmra.mrb[28].mxu0 %vm1787_vm0, %v4438_v24  ;;  %3585 = vmatmul.mubr.msk.bf16.gmra.mrb[28].mxu1 %vm1787_vm0, %v4438_v24 }
 0x208   : > { %v2185_v38 = vpop.f32.mrb[0].mxu0  ;;  %v2637_v39 = vpop.f32.mrb[0].mxu1 }
 0x209   : > { %v2187_v42 = vpop.f32.mrb[1].mxu0  ;;  %v2639_v43 = vpop.f32.mrb[1].mxu1  ;;  %v3753_v46 = vadd.f32 %v2185_v38, %v5372_v36  ;;  %v3785_v47 = vadd.f32 %v2637_v39, %v5374_v37 }
 0x20a   : > { %v2189_v44 = vpop.f32.mrb[2].mxu0  ;;  %v2641_v45 = vpop.f32.mrb[2].mxu1  ;;  %v3754_v52 = vadd.f32 %v2187_v42, %v5376_v40  ;;  %v3786_v53 = vadd.f32 %v2639_v43, %v5378_v41 }
 0x20b   : > { %v3755_v48 = vadd.f32 %v2189_v44, %v5372_v36  ;;  %v3787_v49 = vadd.f32 %v2641_v45, %v5374_v37  ;;  %v2191_v50 = vpop.f32.mrb[3].mxu0  ;;  %v2643_v51 = vpop.f32.mrb[3].mxu1 }
 0x20c   : > { %v3756_v54 = vadd.f32 %v2191_v50, %v5376_v40  ;;  %v3788_v55 = vadd.f32 %v2643_v51, %v5378_v41 }
 0x20d   : > { %v2716_v56 = vpack.c.bf16 %v3755_v48, %v3753_v46  ;;  %v2718_v57 = vpack.c.bf16 %v3787_v49, %v3785_v47 }
 0x20e   : > { %v2717_v58 = vpack.c.bf16 %v3756_v54, %v3754_v52  ;;  %v2719_v59 = vpack.c.bf16 %v3788_v55, %v3786_v53 }
 0x210   : > { %v2195_v60 = vpop.f32.mrb[4].mxu0  ;;  %v2647_v61 = vpop.f32.mrb[4].mxu1  ;;  %3043 = vmatprep.mubr.bf16.mxu0 %v2717_v58  ;;  %3140 = vmatprep.mubr.bf16.mxu1 %v2719_v59 }
 0x211   : > { %v2197_v62 = vpop.f32.mrb[5].mxu0  ;;  %v2649_v63 = vpop.f32.mrb[5].mxu1  ;;  %3044 = vmatmul.mubr.bf16.vlgmr.msra.gmra.mrb[32].mxu0 %v2716_v56  ;;  %3141 = vmatmul.mubr.bf16.vlgmr.msra.gmra.mrb[32].mxu1 %v2718_v57  ;;  %v3757_v2 = vadd.f32 %v2195_v60, %v5372_v36  ;;  %v3789_v3 = vadd.f32 %v2647_v61, %v5374_v37 }
 0x212   : > { %v2199_v0 = vpop.f32.mrb[6].mxu0  ;;  %v2651_v1 = vpop.f32.mrb[6].mxu1  ;;  %v3758_v8 = vadd.f32 %v2197_v62, %v5376_v40  ;;  %v3790_v9 = vadd.f32 %v2649_v63, %v5378_v41 }
 0x213   : > { %v3759_v4 = vadd.f32 %v2199_v0, %v5372_v36  ;;  %v3791_v5 = vadd.f32 %v2651_v1, %v5374_v37  ;;  %v2201_v6 = vpop.f32.mrb[7].mxu0  ;;  %v2653_v7 = vpop.f32.mrb[7].mxu1 }
 0x214   : > { %v3760_v10 = vadd.f32 %v2201_v6, %v5376_v40  ;;  %v3792_v11 = vadd.f32 %v2653_v7, %v5378_v41 }
 0x215   : > { %v2720_v12 = vpack.c.bf16 %v3759_v4, %v3757_v2  ;;  %v2722_v13 = vpack.c.bf16 %v3791_v5, %v3789_v3 }
 0x216   : > { %v2721_v14 = vpack.c.bf16 %v3760_v10, %v3758_v8  ;;  %v2723_v15 = vpack.c.bf16 %v3792_v11, %v3790_v9 }
 0x218   : > { %v2205_v16 = vpop.f32.mrb[8].mxu0  ;;  %v2657_v17 = vpop.f32.mrb[8].mxu1  ;;  %3051 = vmatprep.mubr.bf16.mxu0 %v2721_v14  ;;  %3148 = vmatprep.mubr.bf16.mxu1 %v2723_v15 }
 0x219   : > { %v2207_v18 = vpop.f32.mrb[9].mxu0  ;;  %v2659_v19 = vpop.f32.mrb[9].mxu1  ;;  %3052 = vmatmul.mubr.bf16.gmra.mrb[36].mxu0 %v2720_v12  ;;  %3149 = vmatmul.mubr.bf16.gmra.mrb[36].mxu1 %v2722_v13  ;;  %v3761_v22 = vadd.f32 %v2205_v16, %v5372_v36  ;;  %v3793_v23 = vadd.f32 %v2657_v17, %v5374_v37 }
 0x21a   : > { %v2209_v20 = vpop.f32.mrb[10].mxu0  ;;  %v2661_v21 = vpop.f32.mrb[10].mxu1  ;;  %v3762_v28 = vadd.f32 %v2207_v18, %v5376_v40  ;;  %v3794_v29 = vadd.f32 %v2659_v19, %v5378_v41 }
 0x21b   : > { %v3763_v24 = vadd.f32 %v2209_v20, %v5372_v36  ;;  %v3795_v25 = vadd.f32 %v2661_v21, %v5374_v37  ;;  %v2211_v26 = vpop.f32.mrb[11].mxu0  ;;  %v2663_v27 = vpop.f32.mrb[11].mxu1 }
 0x21c   : > { %v3764_v30 = vadd.f32 %v2211_v26, %v5376_v40  ;;  %v3796_v31 = vadd.f32 %v2663_v27, %v5378_v41 }
 0x21d   : > { %v2724_v32 = vpack.c.bf16 %v3763_v24, %v3761_v22  ;;  %v2726_v33 = vpack.c.bf16 %v3795_v25, %v3793_v23 }
 0x21e   : > { %v2725_v34 = vpack.c.bf16 %v3764_v30, %v3762_v28  ;;  %v2727_v35 = vpack.c.bf16 %v3796_v31, %v3794_v29 }
 0x220   : > { %v2215_v38 = vpop.f32.mrb[12].mxu0  ;;  %v2667_v39 = vpop.f32.mrb[12].mxu1  ;;  %3059 = vmatprep.mubr.bf16.mxu0 %v2725_v34  ;;  %3156 = vmatprep.mubr.bf16.mxu1 %v2727_v35 }
 0x221   : > { %v2217_v42 = vpop.f32.mrb[13].mxu0  ;;  %v2669_v43 = vpop.f32.mrb[13].mxu1  ;;  %3060 = vmatmul.mubr.bf16.gmra.mrb[40].mxu0 %v2724_v32  ;;  %3157 = vmatmul.mubr.bf16.gmra.mrb[40].mxu1 %v2726_v33  ;;  %v3765_v46 = vadd.f32 %v2215_v38, %v5372_v36  ;;  %v3797_v47 = vadd.f32 %v2667_v39, %v5374_v37 }
 0x222   : > { %v2219_v44 = vpop.f32.mrb[14].mxu0  ;;  %v2671_v45 = vpop.f32.mrb[14].mxu1  ;;  %v3766_v52 = vadd.f32 %v2217_v42, %v5376_v40  ;;  %v3798_v53 = vadd.f32 %v2669_v43, %v5378_v41 }
 0x223   : > { %v3767_v48 = vadd.f32 %v2219_v44, %v5372_v36  ;;  %v3799_v49 = vadd.f32 %v2671_v45, %v5374_v37  ;;  %v2221_v50 = vpop.f32.mrb[15].mxu0  ;;  %v2673_v51 = vpop.f32.mrb[15].mxu1 }
 0x224   : > { %v3768_v54 = vadd.f32 %v2221_v50, %v5376_v40  ;;  %v3800_v55 = vadd.f32 %v2673_v51, %v5378_v41 }
 0x225   : > { %v2728_v56 = vpack.c.bf16 %v3767_v48, %v3765_v46  ;;  %v2730_v57 = vpack.c.bf16 %v3799_v49, %v3797_v47 }
 0x226   : > { %v2729_v58 = vpack.c.bf16 %v3768_v54, %v3766_v52  ;;  %v2731_v59 = vpack.c.bf16 %v3800_v55, %v3798_v53 }
 0x228   : > { %v2225_v60 = vpop.f32.mrb[16].mxu0  ;;  %v2677_v61 = vpop.f32.mrb[16].mxu1  ;;  %3067 = vmatprep.mubr.bf16.mxu0 %v2729_v58  ;;  %3164 = vmatprep.mubr.bf16.mxu1 %v2731_v59 }
 0x229   : > { %v2227_v62 = vpop.f32.mrb[17].mxu0  ;;  %v2679_v63 = vpop.f32.mrb[17].mxu1  ;;  %3068 = vmatmul.mubr.bf16.gmra.mrb[44].mxu0 %v2728_v56  ;;  %3165 = vmatmul.mubr.bf16.gmra.mrb[44].mxu1 %v2730_v57  ;;  %v3769_v2 = vadd.f32 %v2225_v60, %v5372_v36  ;;  %v3801_v3 = vadd.f32 %v2677_v61, %v5374_v37 }
 0x22a   : > { %v2229_v0 = vpop.f32.mrb[18].mxu0  ;;  %v2681_v1 = vpop.f32.mrb[18].mxu1  ;;  %v3770_v8 = vadd.f32 %v2227_v62, %v5376_v40  ;;  %v3802_v9 = vadd.f32 %v2679_v63, %v5378_v41 }
 0x22b   : > { %v3771_v4 = vadd.f32 %v2229_v0, %v5372_v36  ;;  %v3803_v5 = vadd.f32 %v2681_v1, %v5374_v37  ;;  %v2231_v6 = vpop.f32.mrb[19].mxu0  ;;  %v2683_v7 = vpop.f32.mrb[19].mxu1 }
 0x22c   : > { %v3772_v10 = vadd.f32 %v2231_v6, %v5376_v40  ;;  %v3804_v11 = vadd.f32 %v2683_v7, %v5378_v41 }
 0x22d   : > { %v2732_v12 = vpack.c.bf16 %v3771_v4, %v3769_v2  ;;  %v2734_v13 = vpack.c.bf16 %v3803_v5, %v3801_v3 }
 0x22e   : > { %v2733_v14 = vpack.c.bf16 %v3772_v10, %v3770_v8  ;;  %v2735_v15 = vpack.c.bf16 %v3804_v11, %v3802_v9 }
 0x230   : > { %v2235_v16 = vpop.f32.mrb[20].mxu0  ;;  %v2687_v17 = vpop.f32.mrb[20].mxu1  ;;  %3075 = vmatprep.mubr.bf16.mxu0 %v2733_v14  ;;  %3172 = vmatprep.mubr.bf16.mxu1 %v2735_v15 }
 0x231   : > { %v2237_v18 = vpop.f32.mrb[21].mxu0  ;;  %v2689_v19 = vpop.f32.mrb[21].mxu1  ;;  %3076 = vmatmul.mubr.bf16.gmra.mrb[48].mxu0 %v2732_v12  ;;  %3173 = vmatmul.mubr.bf16.gmra.mrb[48].mxu1 %v2734_v13  ;;  %v3773_v22 = vadd.f32 %v2235_v16, %v5372_v36  ;;  %v3805_v23 = vadd.f32 %v2687_v17, %v5374_v37  ;;  %v5448_v16 = vld [vmem:[%s5542_s4] ss:$0 sm:$0xff] }
 0x232   : > { %v2239_v20 = vpop.f32.mrb[22].mxu0  ;;  %v2691_v21 = vpop.f32.mrb[22].mxu1  ;;  %v3774_v28 = vadd.f32 %v2237_v18, %v5376_v40  ;;  %v3806_v29 = vadd.f32 %v2689_v19, %v5378_v41 }
 0x233   : > { %v3775_v24 = vadd.f32 %v2239_v20, %v5372_v36  ;;  %v3807_v25 = vadd.f32 %v2691_v21, %v5374_v37  ;;  %v2241_v26 = vpop.f32.mrb[23].mxu0  ;;  %v2693_v27 = vpop.f32.mrb[23].mxu1 }
 0x234   : > { %v3776_v30 = vadd.f32 %v2241_v26, %v5376_v40  ;;  %v3808_v31 = vadd.f32 %v2693_v27, %v5378_v41 }
 0x235   : > { %v2736_v32 = vpack.c.bf16 %v3775_v24, %v3773_v22  ;;  %v2738_v33 = vpack.c.bf16 %v3807_v25, %v3805_v23 }
 0x236   : > { %v2737_v34 = vpack.c.bf16 %v3776_v30, %v3774_v28  ;;  %v2739_v35 = vpack.c.bf16 %v3808_v31, %v3806_v29 }
 0x238   : > { %v2245_v38 = vpop.f32.mrb[24].mxu0  ;;  %v2697_v39 = vpop.f32.mrb[24].mxu1  ;;  %3083 = vmatprep.mubr.bf16.mxu0 %v2737_v34  ;;  %3180 = vmatprep.mubr.bf16.mxu1 %v2739_v35 }
 0x239   : > { %v2247_v42 = vpop.f32.mrb[25].mxu0  ;;  %v2699_v43 = vpop.f32.mrb[25].mxu1  ;;  %3084 = vmatmul.mubr.bf16.gmra.mrb[52].mxu0 %v2736_v32  ;;  %3181 = vmatmul.mubr.bf16.gmra.mrb[52].mxu1 %v2738_v33  ;;  %v3777_v46 = vadd.f32 %v2245_v38, %v5372_v36  ;;  %v3809_v47 = vadd.f32 %v2697_v39, %v5374_v37 }
 0x23a   : > { %v2249_v44 = vpop.f32.mrb[26].mxu0  ;;  %v2701_v45 = vpop.f32.mrb[26].mxu1  ;;  %v3778_v52 = vadd.f32 %v2247_v42, %v5376_v40  ;;  %v3810_v53 = vadd.f32 %v2699_v43, %v5378_v41 }
 0x23b   : > { %v3779_v48 = vadd.f32 %v2249_v44, %v5372_v36  ;;  %v3811_v49 = vadd.f32 %v2701_v45, %v5374_v37  ;;  %v2251_v50 = vpop.f32.mrb[27].mxu0  ;;  %v2703_v51 = vpop.f32.mrb[27].mxu1 }
 0x23c   : > { %v3780_v54 = vadd.f32 %v2251_v50, %v5376_v40  ;;  %v3812_v55 = vadd.f32 %v2703_v51, %v5378_v41 }
 0x23d   : > { %v2740_v56 = vpack.c.bf16 %v3779_v48, %v3777_v46  ;;  %v2742_v57 = vpack.c.bf16 %v3811_v49, %v3809_v47 }
 0x23e   : > { %v2741_v58 = vpack.c.bf16 %v3780_v54, %v3778_v52  ;;  %v2743_v59 = vpack.c.bf16 %v3812_v55, %v3810_v53 }
 0x240   : > { %v2255_v60 = vpop.f32.mrb[28].mxu0  ;;  %v2707_v61 = vpop.f32.mrb[28].mxu1  ;;  %3091 = vmatprep.mubr.bf16.mxu0 %v2741_v58  ;;  %3188 = vmatprep.mubr.bf16.mxu1 %v2743_v59 }
 0x241   : > { %v2257_v62 = vpop.f32.mrb[29].mxu0  ;;  %v2709_v63 = vpop.f32.mrb[29].mxu1  ;;  %3092 = vmatmul.mubr.bf16.gmra.mrb[56].mxu0 %v2740_v56  ;;  %3189 = vmatmul.mubr.bf16.gmra.mrb[56].mxu1 %v2742_v57  ;;  %v3781_v2 = vadd.f32 %v2255_v60, %v5372_v36  ;;  %v3813_v3 = vadd.f32 %v2707_v61, %v5374_v37 }
 0x242   : > { %v2259_v0 = vpop.f32.mrb[30].mxu0  ;;  %v2711_v1 = vpop.f32.mrb[30].mxu1  ;;  %v3782_v8 = vadd.f32 %v2257_v62, %v5376_v40  ;;  %v3814_v9 = vadd.f32 %v2709_v63, %v5378_v41 }
 0x243   : > { %v3783_v4 = vadd.f32 %v2259_v0, %v5372_v36  ;;  %v3815_v5 = vadd.f32 %v2711_v1, %v5374_v37  ;;  %v2261_v6 = vpop.f32.mrb[31].mxu0  ;;  %v2713_v7 = vpop.f32.mrb[31].mxu1 }
 0x244   : > { %v3784_v10 = vadd.f32 %v2261_v6, %v5376_v40  ;;  %v3816_v11 = vadd.f32 %v2713_v7, %v5378_v41 }
 0x245   : > { %v2744_v12 = vpack.c.bf16 %v3783_v4, %v3781_v2  ;;  %v2746_v13 = vpack.c.bf16 %v3815_v5, %v3813_v3 }
 0x246   : > { %v2745_v14 = vpack.c.bf16 %v3784_v10, %v3782_v8  ;;  %v2747_v15 = vpack.c.bf16 %v3816_v11, %v3814_v9 }
 0x248   : > { %3099 = vmatprep.mubr.bf16.mxu0 %v2745_v14  ;;  %3196 = vmatprep.mubr.bf16.mxu1 %v2747_v15 }
 0x249   : > { %3100 = vmatmul.mubr.bf16.gmra.mrb[60].mxu0 %v2744_v12  ;;  %3197 = vmatmul.mubr.bf16.gmra.mrb[60].mxu1 %v2746_v13 }
 0x2e4   : > { %v3641_v36 = vpop.f32.mrb[32].mxu0  ;;  %v3705_v37 = vpop.f32.mrb[32].mxu1 }
 0x2e5   : > { %v3642_v40 = vpop.f32.mrb[33].mxu0  ;;  %v3706_v17 = vpop.f32.mrb[33].mxu1 }
 0x2e6   : > { %v3643_v41 = vadd.f32 %v3642_v40, %v3641_v36  ;;  %v3707_v18 = vadd.f32 %v3706_v17, %v3705_v37  ;;  %v3644_v19 = vpop.f32.mrb[34].mxu0  ;;  %v3708_v20 = vpop.f32.mrb[34].mxu1 }
 0x2e7   : > { %v3645_v21 = vpop.f32.mrb[35].mxu0  ;;  %v3709_v22 = vpop.f32.mrb[35].mxu1 }
 0x2e8   : > { %v3046_v23 = vadd.f32 %v3643_v41, %v5448_v16  ;;  %v3646_v24 = vadd.f32 %v3645_v21, %v3644_v19  ;;  %v3710_v25 = vadd.f32 %v3709_v22, %v3708_v20 }
 0x2ea   : > { %v3143_v26 = vadd.f32 %v3707_v18, %v3046_v23  ;;  %v3049_v27 = vadd.f32 %v3646_v24, %v5448_v16 }
 0x2ec   : > { %3205 = vst [vmem:[%s5454_s12] sm:$0xff] %v3143_v26  ;;  %v3146_v28 = vadd.f32 %v3710_v25, %v3049_v27  ;;  %v3647_v29 = vpop.f32.mrb[36].mxu0  ;;  %v3711_v30 = vpop.f32.mrb[36].mxu1 }
 0x2ed   : > { %v3648_v31 = vpop.f32.mrb[37].mxu0  ;;  %v3712_v32 = vpop.f32.mrb[37].mxu1 }
 0x2ee   : > { %3206 = vst [vmem:[%s5454_s12 + $0x8] sm:$0xff] %v3146_v28  ;;  %v3649_v33 = vadd.f32 %v3648_v31, %v3647_v29  ;;  %v3713_v34 = vadd.f32 %v3712_v32, %v3711_v30  ;;  %v3650_v35 = vpop.f32.mrb[38].mxu0  ;;  %v3714_v38 = vpop.f32.mrb[38].mxu1 }
 0x2ef   : > { %v3651_v39 = vpop.f32.mrb[39].mxu0  ;;  %v3715_v42 = vpop.f32.mrb[39].mxu1 }
 0x2f0   : > { %v3054_v43 = vadd.f32 %v3649_v33, %v5448_v16  ;;  %v3652_v44 = vadd.f32 %v3651_v39, %v3650_v35  ;;  %v3716_v45 = vadd.f32 %v3715_v42, %v3714_v38 }
 0x2f2   : > { %v3151_v46 = vadd.f32 %v3713_v34, %v3054_v43  ;;  %v3057_v47 = vadd.f32 %v3652_v44, %v5448_v16 }
 0x2f4   : > { %3207 = vst [vmem:[%s5454_s12 + $0x10] sm:$0xff] %v3151_v46  ;;  %v3154_v48 = vadd.f32 %v3716_v45, %v3057_v47  ;;  %v3653_v49 = vpop.f32.mrb[40].mxu0  ;;  %v3717_v50 = vpop.f32.mrb[40].mxu1 }
 0x2f5   : > { %v3654_v51 = vpop.f32.mrb[41].mxu0  ;;  %v3718_v52 = vpop.f32.mrb[41].mxu1 }
 0x2f6   : > { %3208 = vst [vmem:[%s5454_s12 + $0x18] sm:$0xff] %v3154_v48  ;;  %v3655_v53 = vadd.f32 %v3654_v51, %v3653_v49  ;;  %v3719_v54 = vadd.f32 %v3718_v52, %v3717_v50  ;;  %v3656_v55 = vpop.f32.mrb[42].mxu0  ;;  %v3720_v56 = vpop.f32.mrb[42].mxu1 }
 0x2f7   : > { %v3657_v57 = vpop.f32.mrb[43].mxu0  ;;  %v3721_v58 = vpop.f32.mrb[43].mxu1 }
 0x2f8   : > { %v3062_v59 = vadd.f32 %v3655_v53, %v5448_v16  ;;  %v3658_v60 = vadd.f32 %v3657_v57, %v3656_v55  ;;  %v3722_v61 = vadd.f32 %v3721_v58, %v3720_v56 }
 0x2fa   : > { %v3159_v62 = vadd.f32 %v3719_v54, %v3062_v59  ;;  %v3065_v63 = vadd.f32 %v3658_v60, %v5448_v16 }
 0x2fc   : > { %3209 = vst [vmem:[%s5454_s12 + $0x20] sm:$0xff] %v3159_v62  ;;  %v3162_v0 = vadd.f32 %v3722_v61, %v3065_v63  ;;  %v3659_v1 = vpop.f32.mrb[44].mxu0  ;;  %v3723_v2 = vpop.f32.mrb[44].mxu1 }
 0x2fd   : > { %v3660_v3 = vpop.f32.mrb[45].mxu0  ;;  %v3724_v4 = vpop.f32.mrb[45].mxu1 }
 0x2fe   : > { %3210 = vst [vmem:[%s5454_s12 + $0x28] sm:$0xff] %v3162_v0  ;;  %v3661_v5 = vadd.f32 %v3660_v3, %v3659_v1  ;;  %v3725_v6 = vadd.f32 %v3724_v4, %v3723_v2  ;;  %v3662_v7 = vpop.f32.mrb[46].mxu0  ;;  %v3726_v8 = vpop.f32.mrb[46].mxu1 }
 0x2ff   : > { %v3663_v9 = vpop.f32.mrb[47].mxu0  ;;  %v3727_v10 = vpop.f32.mrb[47].mxu1 }
 0x300   : > { %v3070_v11 = vadd.f32 %v3661_v5, %v5448_v16  ;;  %v3664_v12 = vadd.f32 %v3663_v9, %v3662_v7  ;;  %v3728_v13 = vadd.f32 %v3727_v10, %v3726_v8 }
 0x302   : > { %v3167_v14 = vadd.f32 %v3725_v6, %v3070_v11  ;;  %v3073_v15 = vadd.f32 %v3664_v12, %v5448_v16 }
 0x304   : > { %3211 = vst [vmem:[%s5454_s12 + $0x30] sm:$0xff] %v3167_v14  ;;  %v3170_v36 = vadd.f32 %v3728_v13, %v3073_v15  ;;  %v3665_v37 = vpop.f32.mrb[48].mxu0  ;;  %v3729_v40 = vpop.f32.mrb[48].mxu1 }
 0x305   : > { %v3666_v17 = vpop.f32.mrb[49].mxu0  ;;  %v3730_v41 = vpop.f32.mrb[49].mxu1 }
 0x306   : > { %3212 = vst [vmem:[%s5454_s12 + $0x38] sm:$0xff] %v3170_v36  ;;  %v3667_v18 = vadd.f32 %v3666_v17, %v3665_v37  ;;  %v3731_v19 = vadd.f32 %v3730_v41, %v3729_v40  ;;  %v3668_v20 = vpop.f32.mrb[50].mxu0  ;;  %v3732_v21 = vpop.f32.mrb[50].mxu1 }
 0x307   : > { %v3669_v22 = vpop.f32.mrb[51].mxu0  ;;  %v3733_v23 = vpop.f32.mrb[51].mxu1 }
 0x308   : > { %v3078_v24 = vadd.f32 %v3667_v18, %v5448_v16  ;;  %v3670_v25 = vadd.f32 %v3669_v22, %v3668_v20  ;;  %v3734_v26 = vadd.f32 %v3733_v23, %v3732_v21 }
 0x30a   : > { %v3175_v27 = vadd.f32 %v3731_v19, %v3078_v24  ;;  %v3081_v28 = vadd.f32 %v3670_v25, %v5448_v16 }
 0x30c   : > { %3213 = vst [vmem:[%s5454_s12 + $0x40] sm:$0xff] %v3175_v27  ;;  %v3178_v29 = vadd.f32 %v3734_v26, %v3081_v28  ;;  %v3671_v30 = vpop.f32.mrb[52].mxu0  ;;  %v3735_v31 = vpop.f32.mrb[52].mxu1 }
 0x30d   : > { %v3672_v32 = vpop.f32.mrb[53].mxu0  ;;  %v3736_v33 = vpop.f32.mrb[53].mxu1 }
 0x30e   : > { %3214 = vst [vmem:[%s5454_s12 + $0x48] sm:$0xff] %v3178_v29  ;;  %v3673_v34 = vadd.f32 %v3672_v32, %v3671_v30  ;;  %v3737_v35 = vadd.f32 %v3736_v33, %v3735_v31  ;;  %v3674_v38 = vpop.f32.mrb[54].mxu0  ;;  %v3738_v39 = vpop.f32.mrb[54].mxu1 }
 0x30f   : > { %v3675_v42 = vpop.f32.mrb[55].mxu0  ;;  %v3739_v43 = vpop.f32.mrb[55].mxu1 }
 0x310   : > { %v3086_v44 = vadd.f32 %v3673_v34, %v5448_v16  ;;  %v3676_v45 = vadd.f32 %v3675_v42, %v3674_v38  ;;  %v3740_v46 = vadd.f32 %v3739_v43, %v3738_v39 }
 0x312   : > { %v3183_v47 = vadd.f32 %v3737_v35, %v3086_v44  ;;  %v3089_v48 = vadd.f32 %v3676_v45, %v5448_v16 }
 0x314   : > { %3215 = vst [vmem:[%s5454_s12 + $0x50] sm:$0xff] %v3183_v47  ;;  %v3186_v49 = vadd.f32 %v3740_v46, %v3089_v48  ;;  %v3677_v50 = vpop.f32.mrb[56].mxu0  ;;  %v3741_v51 = vpop.f32.mrb[56].mxu1 }
 0x315   : > { %v3678_v52 = vpop.f32.mrb[57].mxu0  ;;  %v3742_v53 = vpop.f32.mrb[57].mxu1 }
 0x316   : > { %3216 = vst [vmem:[%s5454_s12 + $0x58] sm:$0xff] %v3186_v49  ;;  %v3679_v54 = vadd.f32 %v3678_v52, %v3677_v50  ;;  %v3743_v55 = vadd.f32 %v3742_v53, %v3741_v51  ;;  %v3680_v56 = vpop.f32.mrb[58].mxu0  ;;  %v3744_v57 = vpop.f32.mrb[58].mxu1 }
 0x317   : > { %v3681_v58 = vpop.f32.mrb[59].mxu0  ;;  %v3745_v59 = vpop.f32.mrb[59].mxu1 }
 0x318   : > { %v3094_v60 = vadd.f32 %v3679_v54, %v5448_v16  ;;  %v3682_v61 = vadd.f32 %v3681_v58, %v3680_v56  ;;  %v3746_v62 = vadd.f32 %v3745_v59, %v3744_v57 }
 0x31a   : > { %v3191_v63 = vadd.f32 %v3743_v55, %v3094_v60  ;;  %v3097_v0 = vadd.f32 %v3682_v61, %v5448_v16 }
 0x31c   : > { %3217 = vst [vmem:[%s5454_s12 + $0x60] sm:$0xff] %v3191_v63  ;;  %v3194_v1 = vadd.f32 %v3746_v62, %v3097_v0  ;;  %v3683_v2 = vpop.f32.mrb[60].mxu0  ;;  %v3747_v3 = vpop.f32.mrb[60].mxu1 }
 0x31d   : > { %v3684_v4 = vpop.f32.mrb[61].mxu0  ;;  %v3748_v5 = vpop.f32.mrb[61].mxu1 }
 0x31e   : > { %3218 = vst [vmem:[%s5454_s12 + $0x68] sm:$0xff] %v3194_v1  ;;  %v3685_v6 = vadd.f32 %v3684_v4, %v3683_v2  ;;  %v3749_v7 = vadd.f32 %v3748_v5, %v3747_v3  ;;  %v3686_v8 = vpop.f32.mrb[62].mxu0  ;;  %v3750_v9 = vpop.f32.mrb[62].mxu1 }
 0x31f   : > { %v3687_v10 = vpop.f32.mrb[63].mxu0  ;;  %v3751_v11 = vpop.f32.mrb[63].mxu1 }
 0x320   : > { %v3102_v12 = vadd.f32 %v3685_v6, %v5448_v16  ;;  %v3688_v13 = vadd.f32 %v3687_v10, %v3686_v8  ;;  %v3752_v14 = vadd.f32 %v3751_v11, %v3750_v9 }
 0x322   : > { %v3199_v15 = vadd.f32 %v3749_v7, %v3102_v12  ;;  %v3105_v36 = vadd.f32 %v3688_v13, %v5448_v16 }
 0x324   : > { %3219 = vst [vmem:[%s5454_s12 + $0x70] sm:$0xff] %v3199_v15  ;;  %v3202_v37 = vadd.f32 %v3752_v14, %v3105_v36 }
 0x326   : > { %3220 = vst [vmem:[%s5454_s12 + $0x78] sm:$0xff] %v3202_v37 }
 0x327   : > { %4512 = shalt.err (!%p4509_p7)
}
 0x328   : > { %s4513_s10 = scalar_lea.hbm %s5489_s23, 2048  ;;  %s4517_s7 = scalar_lea.hbm %s5543_s5, 4096 }
 0x329   : > { %p4514_p8 = scmp.ne.s32.totalorder %s5489_s23, %s4513_s10  ;;  %p4518_p1 = scmp.lt.u32.totalorder %s5489_s23, %s5543_s5 }
 0x32a   : > { %p4519_p0 = scmp.lt.u32.totalorder %s4517_s7, %s4513_s10  ;;  %p4521_p6 = scmp.lt.u32.totalorder %s4513_s10, %s5489_s23 }
 0x32b   : > { %p4515_p11 = pnand %p4514_p8, %p5554_p9 }
 0x32c   : > { %p4520_p5 = por %p4519_p0, %p4518_p1 }
 0x32d   : > { %p4516_p13 = pneg %p4515_p11 }
 0x32e   : > { %p4522_p10 = por %p4521_p6, %p4520_p5 }
 0x330   : > { %p4523_p12 = pnand %p4522_p10, %p4516_p13 }
 0x332   : > { %4526 = shalt.err (!%p4523_p12)
}
 0x333   : > { %s4572_s12 = smov 128   ;;  %s4573_s13 = smov 8  }
 0x334   : > { %4014 = dma.vmem_to_hbm [thread:$0]  (%p5554_p9), %s5491_s14, 2048, %s5489_s23, %s5497_s17, %s4572_s12, %s4572_s12, %s4573_s13  }
 0x335 PF: > { %p4026_p2 = scmp.ge.s32.totalorder %s4565_s21, 2  ;;  %s3250_s15 = sand.u32 1, %s4553_s18  }
 0x336   : > { %p5555_p3 = scmp.ne.s32.totalorder %s5548_s29, 0  ;;  %s3251_s16 = scalar_lea.sflag [#allocation4], %s3250_s15 }
 0x338   : > { %p4021_p4 = pnand %p4026_p2, %p5555_p3 }
 0x33a   : > { %4548 = dma.done.wait (!%p4021_p4), %s3251_s16, 2048  }
 0x33b   : > { %4550 = vsyncadd (!%p4021_p4), %s3251_s16, 4294965248  ;;  %p16_p7 = scmp.ge.s32.totalorder %s4629_s24, 4   ;;  %s5556_s18 = smov %s4557_s19 }
 0x33c   : > { %s5557_s19 = smov %s4561_s20  ;;  %s5558_s20 = smov %s4640_s27 }
 0x33d   : > { %s5559_s21 = smov %s4629_s24  ;;  %18 = sbr.rel (!%p16_p7) target bundleno = 4 (0x4), region = 80 }
 0x344   :  { %3256 = vsyncpa [#allocation3], 1 }
 0x345   :  { %3258 = vsyncpa [#allocation3 + $0x1], 1 }
 0x346   :  { %3259 = vsyncpa [#allocation4], 1 }
 0x347   :  { %3261 = vsyncpa [#allocation4 + $0x1], 1 }

</bundles_post_ra>
